<compile_context>
chip_gen: v6e
topology: v6e:2x2x1
jax: 0.10.0
libtpu: 0.0.40
codegen_flags: <defaults>
</compile_context>

<pallas_src>
import functools

import jax
import jax.numpy as jnp
from jax.experimental import pallas as pl
from jax.experimental.pallas import tpu as pltpu

HIDDEN_SIZE = 64
INPUT_SIZE = 50
NUM_CLASSES = 2

LANE = 128
SUBLANE_BF16 = 16  # bf16 packs 2 rows per sublane -> keep row tiles % 16


def _round_up(x, m):
    return (x + m - 1) // m * m


def lstm_fc_kernel(x_ref, wih_ref, whh_ref, b_ref, wfc_ref, bfc_ref,
                   out_ref, xp_scr, *, seq, bt, hidden, unroll):
    """One batch-chunk: input projection, recurrence, final FC.

    x_ref   : (seq, BT, IP)       bf16   time-major, batch/input padded
    wih_ref : (IP, 4*H)           bf16   packed gates (i, f, g, o), no gate pad
    whh_ref : (H, 4*H)            bf16
    b_ref   : (1, 4*H)            f32    b_ih + b_hh
    wfc_ref : (H, CP)             bf16
    bfc_ref : (1, CP)             f32
    out_ref : (BT, CP)            f32    lane-dense padded logits
    xp_scr  : (seq, BT, 4*H)      bf16   hoisted input projection
    """
    H = hidden

    # ---- Phase 1: input projection for ALL timesteps of this chunk as one
    # MXU matmul (f32 accumulate), bias folded in once, stashed as bf16.
    ip = x_ref.shape[-1]
    x2d = x_ref[...].reshape(seq * bt, ip)
    xp = jnp.dot(x2d, wih_ref[...], preferred_element_type=jnp.float32) + b_ref[...]
    xp_scr[...] = xp.reshape(seq, bt, 4 * H).astype(jnp.bfloat16)

    # ---- Phase 2: sequential recurrence. h/c live in vregs (loop carry);
    # only the bf16 h @ W_hh matmul + gate math remain on the serial path.
    whh = whh_ref[...]  # loop-invariant, VMEM-resident, loaded once

    def step(t, carry):
        h_bf, c = carry
        gates = (jnp.dot(h_bf, whh, preferred_element_type=jnp.float32)
                 + xp_scr[t])                       # f32 + bf16 -> f32
        # Packed 256-lane gates, PyTorch order (i, f, g, o), 64 lanes each.
        i_g = jax.nn.sigmoid(gates[:, 0 * H:1 * H])
        f_g = jax.nn.sigmoid(gates[:, 1 * H:2 * H])
        g_g = jnp.tanh(gates[:, 2 * H:3 * H])
        o_g = jax.nn.sigmoid(gates[:, 3 * H:4 * H])
        c_new = f_g * c + i_g * g_g                 # f32 state
        h_new = o_g * jnp.tanh(c_new)
        return h_new.astype(jnp.bfloat16), c_new    # bf16 shadow feeds MXU

    h0 = jnp.zeros((bt, H), jnp.bfloat16)
    c0 = jnp.zeros((bt, H), jnp.float32)
    h_f, _ = jax.lax.fori_loop(0, seq, step, (h0, c0), unroll=unroll)

    # ---- Phase 3: final FC on h_T; lane-dense full-tile store.
    out_ref[...] = (jnp.dot(h_f, wfc_ref[...], preferred_element_type=jnp.float32)
                    + bfc_ref[...])


def lstm_classifier_forward(token_ids, params):
    """token_ids: (batch, seq) int32. Returns logits (batch, num_classes)."""
    emb = params["embedding"]            # (vocab, input_size), frozen
    w_ih = params["w_ih"]                # (4*hidden, input_size)
    w_hh = params["w_hh"]                # (4*hidden, hidden)
    b = params["b_ih"] + params["b_hh"]  # (4*hidden,)
    w_fc = params["w_fc"]                # (num_classes, hidden)
    b_fc = params["b_fc"]                # (num_classes,)

    batch, seq = token_ids.shape
    hidden = w_hh.shape[1]
    input_size = w_ih.shape[1]
    num_classes = w_fc.shape[0]

    IP = _round_up(input_size, LANE)     # 50  -> 128
    CP = _round_up(num_classes, LANE)    # 2   -> 128
    G = 4 * hidden                       # 256 packed gate lanes (no gate pad)

    # Batch tile: >=16 rows (bf16 sublane pack), large (<=128) before sharding
    # across the parallel grid axis so the MXU sees useful rows per step.
    BT = min(_round_up(max(batch, SUBLANE_BF16), SUBLANE_BF16), 128)
    BP = _round_up(batch, BT)
    num_chunks = BP // BT

    # Embedding lookup (gather) stays in JAX glue; cast to bf16 BEFORE the
    # pad/transpose so the (seq, BP, IP) HBM intermediate is half-size.
    embedded = jnp.take(emb, token_ids, axis=0).astype(jnp.bfloat16)  # (B,S,I)
    x_sbi = jnp.transpose(embedded, (1, 0, 2))                        # (S,B,I)
    x_pad = jnp.zeros((seq, BP, IP), jnp.bfloat16)
    x_pad = x_pad.at[:, :batch, :input_size].set(x_sbi)               # (S,BP,IP)

    # Weights: transpose for x@W form; pad only the input-feature / class
    # dims (zeros there are provably inert); keep the gate dim packed at 4*H.
    wih_pad = jnp.zeros((IP, G), jnp.float32)
    wih_pad = wih_pad.at[:input_size, :].set(
        w_ih.T.astype(jnp.float32)).astype(jnp.bfloat16)              # (IP, 4H)
    whh_pad = w_hh.T.astype(jnp.bfloat16)                             # (H, 4H)
    b_pad = b.reshape(1, G).astype(jnp.float32)                       # (1, 4H)

    wfc_pad = jnp.zeros((hidden, CP), jnp.float32)
    wfc_pad = wfc_pad.at[:, :num_classes].set(
        w_fc.T.astype(jnp.float32)).astype(jnp.bfloat16)              # (H, CP)
    bfc_pad = jnp.zeros((1, CP), jnp.float32)
    bfc_pad = bfc_pad.at[:, :num_classes].set(b_fc.astype(jnp.float32))

    kernel = functools.partial(lstm_fc_kernel, seq=seq, bt=BT, hidden=hidden,
                               unroll=min(seq, 8))

    out_pad = pl.pallas_call(
        kernel,
        out_shape=jax.ShapeDtypeStruct((BP, CP), jnp.float32),
        grid_spec=pltpu.PrefetchScalarGridSpec(
            num_scalar_prefetch=0,
            grid=(num_chunks,),  # independent batch chunks (parallel)
            in_specs=[
                pl.BlockSpec((seq, BT, IP), lambda bch: (0, bch, 0)),  # x
                pl.BlockSpec((IP, G), lambda bch: (0, 0)),             # W_ih^T
                pl.BlockSpec((hidden, G), lambda bch: (0, 0)),         # W_hh^T
                pl.BlockSpec((1, G), lambda bch: (0, 0)),              # bias
                pl.BlockSpec((hidden, CP), lambda bch: (0, 0)),        # W_fc^T
                pl.BlockSpec((1, CP), lambda bch: (0, 0)),             # b_fc
            ],
            out_specs=pl.BlockSpec((BT, CP), lambda bch: (bch, 0)),
            scratch_shapes=[
                pltpu.VMEM((seq, BT, G), jnp.bfloat16),   # x projection (bf16)
            ],
        ),
        compiler_params=pltpu.CompilerParams(
            dimension_semantics=("parallel",),  # batch chunks are independent
            # Toy sizes need far less; re-derive when scaling seq/batch
            # (scoped defaults: 16 MiB v5e, 32 MiB v6e/v7x; v7x physical 64 MiB).
            vmem_limit_bytes=32 * 1024 * 1024,
        ),
    )(x_pad, wih_pad, whh_pad, b_pad, wfc_pad, bfc_pad)

    return out_pad[:batch, :num_classes]


def init_params(key, vocab_size, input_size, hidden_size, num_classes):
    k = jax.random.split(key, 7)
    s = 1.0 / jnp.sqrt(hidden_size)
    return {
        "embedding": jax.random.normal(k[0], (vocab_size, input_size), jnp.float32),
        "w_ih": jax.random.uniform(k[1], (4 * hidden_size, input_size), jnp.float32, -s, s),
        "w_hh": jax.random.uniform(k[2], (4 * hidden_size, hidden_size), jnp.float32, -s, s),
        "b_ih": jax.random.uniform(k[3], (4 * hidden_size,), jnp.float32, -s, s),
        "b_hh": jax.random.uniform(k[4], (4 * hidden_size,), jnp.float32, -s, s),
        "w_fc": jax.random.uniform(k[5], (num_classes, hidden_size), jnp.float32, -s, s),
        "b_fc": jax.random.uniform(k[6], (num_classes,), jnp.float32, -s, s),
    }


if __name__ == "__main__":
    key = jax.random.PRNGKey(0)
    kp, kx = jax.random.split(key)

    batch, seq, vocab = 2, 8, 32
    params = init_params(kp, vocab, INPUT_SIZE, HIDDEN_SIZE, NUM_CLASSES)
    token_ids = jax.random.randint(kx, (batch, seq), 0, vocab, dtype=jnp.int32)

    logits = lstm_classifier_forward(token_ids, params)
    jax.block_until_ready(logits)
    assert logits.shape == (batch, NUM_CLASSES)
    print("KERNEL_OK")
</pallas_src>

<mosaic_0001>
module attributes {stable_mosaic.version = 11 : i64} {
  func.func @lstm_fc_kernel(%arg0: i32, %arg1: memref<8x16x128xbf16, #tpu.memory_space<vmem>>, %arg2: memref<128x256xbf16, #tpu.memory_space<vmem>>, %arg3: memref<64x256xbf16, #tpu.memory_space<vmem>>, %arg4: memref<1x256xf32, #tpu.memory_space<vmem>>, %arg5: memref<64x128xbf16, #tpu.memory_space<vmem>>, %arg6: memref<1x128xf32, #tpu.memory_space<vmem>>, %arg7: memref<16x128xf32, #tpu.memory_space<vmem>>, %arg8: memref<8x16x256xbf16, #tpu.memory_space<vmem>>) attributes {dimension_semantics = [#tpu.dimension_semantics<parallel>], iteration_bounds = array<i64: 1>, scalar_prefetch = 0 : i64, scratch_operands = 1 : i64, tpu.core_type = #tpu.core_type<tc>, window_params = [{transform_indices = @transform_0, window_bounds = array<i64: 8, 16, 128>}, {pipeline_mode = #tpu.pipeline_mode<synchronous>, transform_indices = @transform_1, window_bounds = array<i64: 128, 256>}, {pipeline_mode = #tpu.pipeline_mode<synchronous>, transform_indices = @transform_2, window_bounds = array<i64: 64, 256>}, {pipeline_mode = #tpu.pipeline_mode<synchronous>, transform_indices = @transform_3, window_bounds = array<i64: 1, 256>}, {pipeline_mode = #tpu.pipeline_mode<synchronous>, transform_indices = @transform_4, window_bounds = array<i64: 64, 128>}, {pipeline_mode = #tpu.pipeline_mode<synchronous>, transform_indices = @transform_5, window_bounds = array<i64: 1, 128>}, {transform_indices = @transform_6, window_bounds = array<i64: 16, 128>}]} {
    %c0 = arith.constant 0 : index
    %c0_0 = arith.constant 0 : index
    %c0_1 = arith.constant 0 : index
    %0 = vector.load %arg1[%c0, %c0_0, %c0_1] : memref<8x16x128xbf16, #tpu.memory_space<vmem>>, vector<8x16x128xbf16>
    %1 = vector.shape_cast %0 : vector<8x16x128xbf16> to vector<128x128xbf16>
    %c0_2 = arith.constant 0 : index
    %c0_3 = arith.constant 0 : index
    %2 = vector.load %arg2[%c0_2, %c0_3] : memref<128x256xbf16, #tpu.memory_space<vmem>>, vector<128x256xbf16>
    %cst = arith.constant dense<0.000000e+00> : vector<128x256xf32>
    %3 = tpu.matmul %1, %2, %cst {dimension_numbers = #tpu.dot_dimension_numbers<[1], [0], [0], [1], [0, 0, 1, 1], [], []>} : vector<128x128xbf16>, vector<128x256xbf16>, vector<128x256xf32> -> vector<128x256xf32>
    %c0_4 = arith.constant 0 : index
    %c0_5 = arith.constant 0 : index
    %4 = vector.load %arg4[%c0_4, %c0_5] : memref<1x256xf32, #tpu.memory_space<vmem>>, vector<1x256xf32>
    %5 = vector.broadcast %4 : vector<1x256xf32> to vector<128x256xf32>
    %6 = arith.addf %3, %5 : vector<128x256xf32>
    %7 = vector.shape_cast %6 : vector<128x256xf32> to vector<8x16x256xf32>
    %8 = arith.truncf %7 : vector<8x16x256xf32> to vector<8x16x256xbf16>
    %c0_6 = arith.constant 0 : index
    %c0_7 = arith.constant 0 : index
    %c0_8 = arith.constant 0 : index
    %9 = vector.load %arg8[%c0_6, %c0_7, %c0_8] : memref<8x16x256xbf16, #tpu.memory_space<vmem>>, vector<8x16x256xbf16>
    tpu.vector_store %arg8[%c0_6, %c0_7, %c0_8], %8 {strides = array<i32>} : memref<8x16x256xbf16, #tpu.memory_space<vmem>>, vector<8x16x256xbf16>,
    %c0_9 = arith.constant 0 : index
    %c0_10 = arith.constant 0 : index
    %10 = vector.load %arg3[%c0_9, %c0_10] : memref<64x256xbf16, #tpu.memory_space<vmem>>, vector<64x256xbf16>
    %cst_11 = arith.constant 0.000000e+00 : bf16
    %11 = vector.broadcast %cst_11 : bf16 to vector<16x64xbf16>
    %cst_12 = arith.constant 0.000000e+00 : f32
    %12 = vector.broadcast %cst_12 : f32 to vector<16x64xf32>
    %c0_i32 = arith.constant 0 : i32
    %cst_13 = arith.constant dense<0.000000e+00> : vector<16x256xf32>
    %13 = tpu.matmul %11, %10, %cst_13 {dimension_numbers = #tpu.dot_dimension_numbers<[1], [0], [0], [1], [0, 0, 1, 1], [], []>} : vector<16x64xbf16>, vector<64x256xbf16>, vector<16x256xf32> -> vector<16x256xf32>
    %14 = arith.index_cast %c0_i32 : i32 to index
    %c0_14 = arith.constant 0 : index
    %c0_15 = arith.constant 0 : index
    %15 = vector.load %arg8[%14, %c0_14, %c0_15] : memref<8x16x256xbf16, #tpu.memory_space<vmem>>, vector<1x16x256xbf16>
    %16 = vector.shape_cast %15 : vector<1x16x256xbf16> to vector<16x256xbf16>
    %17 = arith.extf %16 : vector<16x256xbf16> to vector<16x256xf32>
    %18 = arith.addf %13, %17 : vector<16x256xf32>
    %19 = vector.extract_strided_slice %18 {offsets = [0, 0], sizes = [16, 64], strides = [1, 1]} : vector<16x256xf32> to vector<16x64xf32>
    %20 = arith.negf %19 : vector<16x64xf32>
    %21 = math.exp %20 : vector<16x64xf32>
    %cst_16 = arith.constant 1.000000e+00 : f32
    %22 = vector.broadcast %cst_16 : f32 to vector<16x64xf32>
    %23 = arith.addf %22, %21 : vector<16x64xf32>
    %24 = arith.divf %22, %23 : vector<16x64xf32>
    %25 = vector.extract_strided_slice %18 {offsets = [0, 64], sizes = [16, 64], strides = [1, 1]} : vector<16x256xf32> to vector<16x64xf32>
    %26 = arith.negf %25 : vector<16x64xf32>
    %27 = math.exp %26 : vector<16x64xf32>
    %cst_17 = arith.constant 1.000000e+00 : f32
    %28 = vector.broadcast %cst_17 : f32 to vector<16x64xf32>
    %29 = arith.addf %28, %27 : vector<16x64xf32>
    %30 = arith.divf %28, %29 : vector<16x64xf32>
    %31 = vector.extract_strided_slice %18 {offsets = [0, 128], sizes = [16, 64], strides = [1, 1]} : vector<16x256xf32> to vector<16x64xf32>
    %32 = math.tanh %31 : vector<16x64xf32>
    %33 = vector.extract_strided_slice %18 {offsets = [0, 192], sizes = [16, 64], strides = [1, 1]} : vector<16x256xf32> to vector<16x64xf32>
    %34 = arith.negf %33 : vector<16x64xf32>
    %35 = math.exp %34 : vector<16x64xf32>
    %cst_18 = arith.constant 1.000000e+00 : f32
    %36 = vector.broadcast %cst_18 : f32 to vector<16x64xf32>
    %37 = arith.addf %36, %35 : vector<16x64xf32>
    %38 = arith.divf %36, %37 : vector<16x64xf32>
    %39 = arith.mulf %30, %12 : vector<16x64xf32>
    %40 = arith.mulf %24, %32 : vector<16x64xf32>
    %41 = arith.addf %39, %40 : vector<16x64xf32>
    %42 = math.tanh %41 : vector<16x64xf32>
    %43 = arith.mulf %38, %42 : vector<16x64xf32>
    %44 = arith.truncf %43 : vector<16x64xf32> to vector<16x64xbf16>
    %c1_i32 = arith.constant 1 : i32
    %cst_19 = arith.constant dense<0.000000e+00> : vector<16x256xf32>
    %45 = tpu.matmul %44, %10, %cst_19 {dimension_numbers = #tpu.dot_dimension_numbers<[1], [0], [0], [1], [0, 0, 1, 1], [], []>} : vector<16x64xbf16>, vector<64x256xbf16>, vector<16x256xf32> -> vector<16x256xf32>
    %46 = arith.index_cast %c1_i32 : i32 to index
    %c0_20 = arith.constant 0 : index
    %c0_21 = arith.constant 0 : index
    %47 = vector.load %arg8[%46, %c0_20, %c0_21] : memref<8x16x256xbf16, #tpu.memory_space<vmem>>, vector<1x16x256xbf16>
    %48 = vector.shape_cast %47 : vector<1x16x256xbf16> to vector<16x256xbf16>
    %49 = arith.extf %48 : vector<16x256xbf16> to vector<16x256xf32>
    %50 = arith.addf %45, %49 : vector<16x256xf32>
    %51 = vector.extract_strided_slice %50 {offsets = [0, 0], sizes = [16, 64], strides = [1, 1]} : vector<16x256xf32> to vector<16x64xf32>
    %52 = arith.negf %51 : vector<16x64xf32>
    %53 = math.exp %52 : vector<16x64xf32>
    %cst_22 = arith.constant 1.000000e+00 : f32
    %54 = vector.broadcast %cst_22 : f32 to vector<16x64xf32>
    %55 = arith.addf %54, %53 : vector<16x64xf32>
    %56 = arith.divf %54, %55 : vector<16x64xf32>
    %57 = vector.extract_strided_slice %50 {offsets = [0, 64], sizes = [16, 64], strides = [1, 1]} : vector<16x256xf32> to vector<16x64xf32>
    %58 = arith.negf %57 : vector<16x64xf32>
    %59 = math.exp %58 : vector<16x64xf32>
    %cst_23 = arith.constant 1.000000e+00 : f32
    %60 = vector.broadcast %cst_23 : f32 to vector<16x64xf32>
    %61 = arith.addf %60, %59 : vector<16x64xf32>
    %62 = arith.divf %60, %61 : vector<16x64xf32>
    %63 = vector.extract_strided_slice %50 {offsets = [0, 128], sizes = [16, 64], strides = [1, 1]} : vector<16x256xf32> to vector<16x64xf32>
    %64 = math.tanh %63 : vector<16x64xf32>
    %65 = vector.extract_strided_slice %50 {offsets = [0, 192], sizes = [16, 64], strides = [1, 1]} : vector<16x256xf32> to vector<16x64xf32>
    %66 = arith.negf %65 : vector<16x64xf32>
    %67 = math.exp %66 : vector<16x64xf32>
    %cst_24 = arith.constant 1.000000e+00 : f32
    %68 = vector.broadcast %cst_24 : f32 to vector<16x64xf32>
    %69 = arith.addf %68, %67 : vector<16x64xf32>
    %70 = arith.divf %68, %69 : vector<16x64xf32>
    %71 = arith.mulf %62, %41 : vector<16x64xf32>
    %72 = arith.mulf %56, %64 : vector<16x64xf32>
    %73 = arith.addf %71, %72 : vector<16x64xf32>
    %74 = math.tanh %73 : vector<16x64xf32>
    %75 = arith.mulf %70, %74 : vector<16x64xf32>
    %76 = arith.truncf %75 : vector<16x64xf32> to vector<16x64xbf16>
    %c2_i32 = arith.constant 2 : i32
    %cst_25 = arith.constant dense<0.000000e+00> : vector<16x256xf32>
    %77 = tpu.matmul %76, %10, %cst_25 {dimension_numbers = #tpu.dot_dimension_numbers<[1], [0], [0], [1], [0, 0, 1, 1], [], []>} : vector<16x64xbf16>, vector<64x256xbf16>, vector<16x256xf32> -> vector<16x256xf32>
    %78 = arith.index_cast %c2_i32 : i32 to index
    %c0_26 = arith.constant 0 : index
    %c0_27 = arith.constant 0 : index
    %79 = vector.load %arg8[%78, %c0_26, %c0_27] : memref<8x16x256xbf16, #tpu.memory_space<vmem>>, vector<1x16x256xbf16>
    %80 = vector.shape_cast %79 : vector<1x16x256xbf16> to vector<16x256xbf16>
    %81 = arith.extf %80 : vector<16x256xbf16> to vector<16x256xf32>
    %82 = arith.addf %77, %81 : vector<16x256xf32>
    %83 = vector.extract_strided_slice %82 {offsets = [0, 0], sizes = [16, 64], strides = [1, 1]} : vector<16x256xf32> to vector<16x64xf32>
    %84 = arith.negf %83 : vector<16x64xf32>
    %85 = math.exp %84 : vector<16x64xf32>
    %cst_28 = arith.constant 1.000000e+00 : f32
    %86 = vector.broadcast %cst_28 : f32 to vector<16x64xf32>
    %87 = arith.addf %86, %85 : vector<16x64xf32>
    %88 = arith.divf %86, %87 : vector<16x64xf32>
    %89 = vector.extract_strided_slice %82 {offsets = [0, 64], sizes = [16, 64], strides = [1, 1]} : vector<16x256xf32> to vector<16x64xf32>
    %90 = arith.negf %89 : vector<16x64xf32>
    %91 = math.exp %90 : vector<16x64xf32>
    %cst_29 = arith.constant 1.000000e+00 : f32
    %92 = vector.broadcast %cst_29 : f32 to vector<16x64xf32>
    %93 = arith.addf %92, %91 : vector<16x64xf32>
    %94 = arith.divf %92, %93 : vector<16x64xf32>
    %95 = vector.extract_strided_slice %82 {offsets = [0, 128], sizes = [16, 64], strides = [1, 1]} : vector<16x256xf32> to vector<16x64xf32>
    %96 = math.tanh %95 : vector<16x64xf32>
    %97 = vector.extract_strided_slice %82 {offsets = [0, 192], sizes = [16, 64], strides = [1, 1]} : vector<16x256xf32> to vector<16x64xf32>
    %98 = arith.negf %97 : vector<16x64xf32>
    %99 = math.exp %98 : vector<16x64xf32>
    %cst_30 = arith.constant 1.000000e+00 : f32
    %100 = vector.broadcast %cst_30 : f32 to vector<16x64xf32>
    %101 = arith.addf %100, %99 : vector<16x64xf32>
    %102 = arith.divf %100, %101 : vector<16x64xf32>
    %103 = arith.mulf %94, %73 : vector<16x64xf32>
    %104 = arith.mulf %88, %96 : vector<16x64xf32>
    %105 = arith.addf %103, %104 : vector<16x64xf32>
    %106 = math.tanh %105 : vector<16x64xf32>
    %107 = arith.mulf %102, %106 : vector<16x64xf32>
    %108 = arith.truncf %107 : vector<16x64xf32> to vector<16x64xbf16>
    %c3_i32 = arith.constant 3 : i32
    %cst_31 = arith.constant dense<0.000000e+00> : vector<16x256xf32>
    %109 = tpu.matmul %108, %10, %cst_31 {dimension_numbers = #tpu.dot_dimension_numbers<[1], [0], [0], [1], [0, 0, 1, 1], [], []>} : vector<16x64xbf16>, vector<64x256xbf16>, vector<16x256xf32> -> vector<16x256xf32>
    %110 = arith.index_cast %c3_i32 : i32 to index
    %c0_32 = arith.constant 0 : index
    %c0_33 = arith.constant 0 : index
    %111 = vector.load %arg8[%110, %c0_32, %c0_33] : memref<8x16x256xbf16, #tpu.memory_space<vmem>>, vector<1x16x256xbf16>
    %112 = vector.shape_cast %111 : vector<1x16x256xbf16> to vector<16x256xbf16>
    %113 = arith.extf %112 : vector<16x256xbf16> to vector<16x256xf32>
    %114 = arith.addf %109, %113 : vector<16x256xf32>
    %115 = vector.extract_strided_slice %114 {offsets = [0, 0], sizes = [16, 64], strides = [1, 1]} : vector<16x256xf32> to vector<16x64xf32>
    %116 = arith.negf %115 : vector<16x64xf32>
    %117 = math.exp %116 : vector<16x64xf32>
    %cst_34 = arith.constant 1.000000e+00 : f32
    %118 = vector.broadcast %cst_34 : f32 to vector<16x64xf32>
    %119 = arith.addf %118, %117 : vector<16x64xf32>
    %120 = arith.divf %118, %119 : vector<16x64xf32>
    %121 = vector.extract_strided_slice %114 {offsets = [0, 64], sizes = [16, 64], strides = [1, 1]} : vector<16x256xf32> to vector<16x64xf32>
    %122 = arith.negf %121 : vector<16x64xf32>
    %123 = math.exp %122 : vector<16x64xf32>
    %cst_35 = arith.constant 1.000000e+00 : f32
    %124 = vector.broadcast %cst_35 : f32 to vector<16x64xf32>
    %125 = arith.addf %124, %123 : vector<16x64xf32>
    %126 = arith.divf %124, %125 : vector<16x64xf32>
    %127 = vector.extract_strided_slice %114 {offsets = [0, 128], sizes = [16, 64], strides = [1, 1]} : vector<16x256xf32> to vector<16x64xf32>
    %128 = math.tanh %127 : vector<16x64xf32>
    %129 = vector.extract_strided_slice %114 {offsets = [0, 192], sizes = [16, 64], strides = [1, 1]} : vector<16x256xf32> to vector<16x64xf32>
    %130 = arith.negf %129 : vector<16x64xf32>
    %131 = math.exp %130 : vector<16x64xf32>
    %cst_36 = arith.constant 1.000000e+00 : f32
    %132 = vector.broadcast %cst_36 : f32 to vector<16x64xf32>
    %133 = arith.addf %132, %131 : vector<16x64xf32>
    %134 = arith.divf %132, %133 : vector<16x64xf32>
    %135 = arith.mulf %126, %105 : vector<16x64xf32>
    %136 = arith.mulf %120, %128 : vector<16x64xf32>
    %137 = arith.addf %135, %136 : vector<16x64xf32>
    %138 = math.tanh %137 : vector<16x64xf32>
    %139 = arith.mulf %134, %138 : vector<16x64xf32>
    %140 = arith.truncf %139 : vector<16x64xf32> to vector<16x64xbf16>
    %c4_i32 = arith.constant 4 : i32
    %cst_37 = arith.constant dense<0.000000e+00> : vector<16x256xf32>
    %141 = tpu.matmul %140, %10, %cst_37 {dimension_numbers = #tpu.dot_dimension_numbers<[1], [0], [0], [1], [0, 0, 1, 1], [], []>} : vector<16x64xbf16>, vector<64x256xbf16>, vector<16x256xf32> -> vector<16x256xf32>
    %142 = arith.index_cast %c4_i32 : i32 to index
    %c0_38 = arith.constant 0 : index
    %c0_39 = arith.constant 0 : index
    %143 = vector.load %arg8[%142, %c0_38, %c0_39] : memref<8x16x256xbf16, #tpu.memory_space<vmem>>, vector<1x16x256xbf16>
    %144 = vector.shape_cast %143 : vector<1x16x256xbf16> to vector<16x256xbf16>
    %145 = arith.extf %144 : vector<16x256xbf16> to vector<16x256xf32>
    %146 = arith.addf %141, %145 : vector<16x256xf32>
    %147 = vector.extract_strided_slice %146 {offsets = [0, 0], sizes = [16, 64], strides = [1, 1]} : vector<16x256xf32> to vector<16x64xf32>
    %148 = arith.negf %147 : vector<16x64xf32>
    %149 = math.exp %148 : vector<16x64xf32>
    %cst_40 = arith.constant 1.000000e+00 : f32
    %150 = vector.broadcast %cst_40 : f32 to vector<16x64xf32>
    %151 = arith.addf %150, %149 : vector<16x64xf32>
    %152 = arith.divf %150, %151 : vector<16x64xf32>
    %153 = vector.extract_strided_slice %146 {offsets = [0, 64], sizes = [16, 64], strides = [1, 1]} : vector<16x256xf32> to vector<16x64xf32>
    %154 = arith.negf %153 : vector<16x64xf32>
    %155 = math.exp %154 : vector<16x64xf32>
    %cst_41 = arith.constant 1.000000e+00 : f32
    %156 = vector.broadcast %cst_41 : f32 to vector<16x64xf32>
    %157 = arith.addf %156, %155 : vector<16x64xf32>
    %158 = arith.divf %156, %157 : vector<16x64xf32>
    %159 = vector.extract_strided_slice %146 {offsets = [0, 128], sizes = [16, 64], strides = [1, 1]} : vector<16x256xf32> to vector<16x64xf32>
    %160 = math.tanh %159 : vector<16x64xf32>
    %161 = vector.extract_strided_slice %146 {offsets = [0, 192], sizes = [16, 64], strides = [1, 1]} : vector<16x256xf32> to vector<16x64xf32>
    %162 = arith.negf %161 : vector<16x64xf32>
    %163 = math.exp %162 : vector<16x64xf32>
    %cst_42 = arith.constant 1.000000e+00 : f32
    %164 = vector.broadcast %cst_42 : f32 to vector<16x64xf32>
    %165 = arith.addf %164, %163 : vector<16x64xf32>
    %166 = arith.divf %164, %165 : vector<16x64xf32>
    %167 = arith.mulf %158, %137 : vector<16x64xf32>
    %168 = arith.mulf %152, %160 : vector<16x64xf32>
    %169 = arith.addf %167, %168 : vector<16x64xf32>
    %170 = math.tanh %169 : vector<16x64xf32>
    %171 = arith.mulf %166, %170 : vector<16x64xf32>
    %172 = arith.truncf %171 : vector<16x64xf32> to vector<16x64xbf16>
    %c5_i32 = arith.constant 5 : i32
    %cst_43 = arith.constant dense<0.000000e+00> : vector<16x256xf32>
    %173 = tpu.matmul %172, %10, %cst_43 {dimension_numbers = #tpu.dot_dimension_numbers<[1], [0], [0], [1], [0, 0, 1, 1], [], []>} : vector<16x64xbf16>, vector<64x256xbf16>, vector<16x256xf32> -> vector<16x256xf32>
    %174 = arith.index_cast %c5_i32 : i32 to index
    %c0_44 = arith.constant 0 : index
    %c0_45 = arith.constant 0 : index
    %175 = vector.load %arg8[%174, %c0_44, %c0_45] : memref<8x16x256xbf16, #tpu.memory_space<vmem>>, vector<1x16x256xbf16>
    %176 = vector.shape_cast %175 : vector<1x16x256xbf16> to vector<16x256xbf16>
    %177 = arith.extf %176 : vector<16x256xbf16> to vector<16x256xf32>
    %178 = arith.addf %173, %177 : vector<16x256xf32>
    %179 = vector.extract_strided_slice %178 {offsets = [0, 0], sizes = [16, 64], strides = [1, 1]} : vector<16x256xf32> to vector<16x64xf32>
    %180 = arith.negf %179 : vector<16x64xf32>
    %181 = math.exp %180 : vector<16x64xf32>
    %cst_46 = arith.constant 1.000000e+00 : f32
    %182 = vector.broadcast %cst_46 : f32 to vector<16x64xf32>
    %183 = arith.addf %182, %181 : vector<16x64xf32>
    %184 = arith.divf %182, %183 : vector<16x64xf32>
    %185 = vector.extract_strided_slice %178 {offsets = [0, 64], sizes = [16, 64], strides = [1, 1]} : vector<16x256xf32> to vector<16x64xf32>
    %186 = arith.negf %185 : vector<16x64xf32>
    %187 = math.exp %186 : vector<16x64xf32>
    %cst_47 = arith.constant 1.000000e+00 : f32
    %188 = vector.broadcast %cst_47 : f32 to vector<16x64xf32>
    %189 = arith.addf %188, %187 : vector<16x64xf32>
    %190 = arith.divf %188, %189 : vector<16x64xf32>
    %191 = vector.extract_strided_slice %178 {offsets = [0, 128], sizes = [16, 64], strides = [1, 1]} : vector<16x256xf32> to vector<16x64xf32>
    %192 = math.tanh %191 : vector<16x64xf32>
    %193 = vector.extract_strided_slice %178 {offsets = [0, 192], sizes = [16, 64], strides = [1, 1]} : vector<16x256xf32> to vector<16x64xf32>
    %194 = arith.negf %193 : vector<16x64xf32>
    %195 = math.exp %194 : vector<16x64xf32>
    %cst_48 = arith.constant 1.000000e+00 : f32
    %196 = vector.broadcast %cst_48 : f32 to vector<16x64xf32>
    %197 = arith.addf %196, %195 : vector<16x64xf32>
    %198 = arith.divf %196, %197 : vector<16x64xf32>
    %199 = arith.mulf %190, %169 : vector<16x64xf32>
    %200 = arith.mulf %184, %192 : vector<16x64xf32>
    %201 = arith.addf %199, %200 : vector<16x64xf32>
    %202 = math.tanh %201 : vector<16x64xf32>
    %203 = arith.mulf %198, %202 : vector<16x64xf32>
    %204 = arith.truncf %203 : vector<16x64xf32> to vector<16x64xbf16>
    %c6_i32 = arith.constant 6 : i32
    %cst_49 = arith.constant dense<0.000000e+00> : vector<16x256xf32>
    %205 = tpu.matmul %204, %10, %cst_49 {dimension_numbers = #tpu.dot_dimension_numbers<[1], [0], [0], [1], [0, 0, 1, 1], [], []>} : vector<16x64xbf16>, vector<64x256xbf16>, vector<16x256xf32> -> vector<16x256xf32>
    %206 = arith.index_cast %c6_i32 : i32 to index
    %c0_50 = arith.constant 0 : index
    %c0_51 = arith.constant 0 : index
    %207 = vector.load %arg8[%206, %c0_50, %c0_51] : memref<8x16x256xbf16, #tpu.memory_space<vmem>>, vector<1x16x256xbf16>
    %208 = vector.shape_cast %207 : vector<1x16x256xbf16> to vector<16x256xbf16>
    %209 = arith.extf %208 : vector<16x256xbf16> to vector<16x256xf32>
    %210 = arith.addf %205, %209 : vector<16x256xf32>
    %211 = vector.extract_strided_slice %210 {offsets = [0, 0], sizes = [16, 64], strides = [1, 1]} : vector<16x256xf32> to vector<16x64xf32>
    %212 = arith.negf %211 : vector<16x64xf32>
    %213 = math.exp %212 : vector<16x64xf32>
    %cst_52 = arith.constant 1.000000e+00 : f32
    %214 = vector.broadcast %cst_52 : f32 to vector<16x64xf32>
    %215 = arith.addf %214, %213 : vector<16x64xf32>
    %216 = arith.divf %214, %215 : vector<16x64xf32>
    %217 = vector.extract_strided_slice %210 {offsets = [0, 64], sizes = [16, 64], strides = [1, 1]} : vector<16x256xf32> to vector<16x64xf32>
    %218 = arith.negf %217 : vector<16x64xf32>
    %219 = math.exp %218 : vector<16x64xf32>
    %cst_53 = arith.constant 1.000000e+00 : f32
    %220 = vector.broadcast %cst_53 : f32 to vector<16x64xf32>
    %221 = arith.addf %220, %219 : vector<16x64xf32>
    %222 = arith.divf %220, %221 : vector<16x64xf32>
    %223 = vector.extract_strided_slice %210 {offsets = [0, 128], sizes = [16, 64], strides = [1, 1]} : vector<16x256xf32> to vector<16x64xf32>
    %224 = math.tanh %223 : vector<16x64xf32>
    %225 = vector.extract_strided_slice %210 {offsets = [0, 192], sizes = [16, 64], strides = [1, 1]} : vector<16x256xf32> to vector<16x64xf32>
    %226 = arith.negf %225 : vector<16x64xf32>
    %227 = math.exp %226 : vector<16x64xf32>
    %cst_54 = arith.constant 1.000000e+00 : f32
    %228 = vector.broadcast %cst_54 : f32 to vector<16x64xf32>
    %229 = arith.addf %228, %227 : vector<16x64xf32>
    %230 = arith.divf %228, %229 : vector<16x64xf32>
    %231 = arith.mulf %222, %201 : vector<16x64xf32>
    %232 = arith.mulf %216, %224 : vector<16x64xf32>
    %233 = arith.addf %231, %232 : vector<16x64xf32>
    %234 = math.tanh %233 : vector<16x64xf32>
    %235 = arith.mulf %230, %234 : vector<16x64xf32>
    %236 = arith.truncf %235 : vector<16x64xf32> to vector<16x64xbf16>
    %c7_i32 = arith.constant 7 : i32
    %cst_55 = arith.constant dense<0.000000e+00> : vector<16x256xf32>
    %237 = tpu.matmul %236, %10, %cst_55 {dimension_numbers = #tpu.dot_dimension_numbers<[1], [0], [0], [1], [0, 0, 1, 1], [], []>} : vector<16x64xbf16>, vector<64x256xbf16>, vector<16x256xf32> -> vector<16x256xf32>
    %238 = arith.index_cast %c7_i32 : i32 to index
    %c0_56 = arith.constant 0 : index
    %c0_57 = arith.constant 0 : index
    %239 = vector.load %arg8[%238, %c0_56, %c0_57] : memref<8x16x256xbf16, #tpu.memory_space<vmem>>, vector<1x16x256xbf16>
    %240 = vector.shape_cast %239 : vector<1x16x256xbf16> to vector<16x256xbf16>
    %241 = arith.extf %240 : vector<16x256xbf16> to vector<16x256xf32>
    %242 = arith.addf %237, %241 : vector<16x256xf32>
    %243 = vector.extract_strided_slice %242 {offsets = [0, 0], sizes = [16, 64], strides = [1, 1]} : vector<16x256xf32> to vector<16x64xf32>
    %244 = arith.negf %243 : vector<16x64xf32>
    %245 = math.exp %244 : vector<16x64xf32>
    %cst_58 = arith.constant 1.000000e+00 : f32
    %246 = vector.broadcast %cst_58 : f32 to vector<16x64xf32>
    %247 = arith.addf %246, %245 : vector<16x64xf32>
    %248 = arith.divf %246, %247 : vector<16x64xf32>
    %249 = vector.extract_strided_slice %242 {offsets = [0, 64], sizes = [16, 64], strides = [1, 1]} : vector<16x256xf32> to vector<16x64xf32>
    %250 = arith.negf %249 : vector<16x64xf32>
    %251 = math.exp %250 : vector<16x64xf32>
    %cst_59 = arith.constant 1.000000e+00 : f32
    %252 = vector.broadcast %cst_59 : f32 to vector<16x64xf32>
    %253 = arith.addf %252, %251 : vector<16x64xf32>
    %254 = arith.divf %252, %253 : vector<16x64xf32>
    %255 = vector.extract_strided_slice %242 {offsets = [0, 128], sizes = [16, 64], strides = [1, 1]} : vector<16x256xf32> to vector<16x64xf32>
    %256 = math.tanh %255 : vector<16x64xf32>
    %257 = vector.extract_strided_slice %242 {offsets = [0, 192], sizes = [16, 64], strides = [1, 1]} : vector<16x256xf32> to vector<16x64xf32>
    %258 = arith.negf %257 : vector<16x64xf32>
    %259 = math.exp %258 : vector<16x64xf32>
    %cst_60 = arith.constant 1.000000e+00 : f32
    %260 = vector.broadcast %cst_60 : f32 to vector<16x64xf32>
    %261 = arith.addf %260, %259 : vector<16x64xf32>
    %262 = arith.divf %260, %261 : vector<16x64xf32>
    %263 = arith.mulf %254, %233 : vector<16x64xf32>
    %264 = arith.mulf %248, %256 : vector<16x64xf32>
    %265 = arith.addf %263, %264 : vector<16x64xf32>
    %266 = math.tanh %265 : vector<16x64xf32>
    %267 = arith.mulf %262, %266 : vector<16x64xf32>
    %268 = arith.truncf %267 : vector<16x64xf32> to vector<16x64xbf16>
    %c8_i32 = arith.constant 8 : i32
    %c0_61 = arith.constant 0 : index
    %c0_62 = arith.constant 0 : index
    %269 = vector.load %arg5[%c0_61, %c0_62] : memref<64x128xbf16, #tpu.memory_space<vmem>>, vector<64x128xbf16>
    %cst_63 = arith.constant dense<0.000000e+00> : vector<16x128xf32>
    %270 = tpu.matmul %268, %269, %cst_63 {dimension_numbers = #tpu.dot_dimension_numbers<[1], [0], [0], [1], [0, 0, 1, 1], [], []>} : vector<16x64xbf16>, vector<64x128xbf16>, vector<16x128xf32> -> vector<16x128xf32>
    %c0_64 = arith.constant 0 : index
    %c0_65 = arith.constant 0 : index
    %271 = vector.load %arg6[%c0_64, %c0_65] : memref<1x128xf32, #tpu.memory_space<vmem>>, vector<1x128xf32>
    %272 = vector.broadcast %271 : vector<1x128xf32> to vector<16x128xf32>
    %273 = arith.addf %270, %272 : vector<16x128xf32>
    %c0_66 = arith.constant 0 : index
    %c0_67 = arith.constant 0 : index
    %274 = vector.load %arg7[%c0_66, %c0_67] : memref<16x128xf32, #tpu.memory_space<vmem>>, vector<16x128xf32>
    tpu.vector_store %arg7[%c0_66, %c0_67], %273 {strides = array<i32>} : memref<16x128xf32, #tpu.memory_space<vmem>>, vector<16x128xf32>,
    return
  }
  func.func @transform_0(%arg0: i32) -> (i32, i32, i32) {
    %c0_i32 = arith.constant 0 : i32
    %c0_i32_0 = arith.constant 0 : i32
    %c0_i32_1 = arith.constant 0 : i32
    return %c0_i32, %arg0, %c0_i32_0 : i32, i32, i32
  }
  func.func @transform_1(%arg0: i32) -> (i32, i32) {
    %c0_i32 = arith.constant 0 : i32
    %c0_i32_0 = arith.constant 0 : i32
    %c0_i32_1 = arith.constant 0 : i32
    return %c0_i32, %c0_i32_0 : i32, i32
  }
  func.func @transform_2(%arg0: i32) -> (i32, i32) {
    %c0_i32 = arith.constant 0 : i32
    %c0_i32_0 = arith.constant 0 : i32
    %c0_i32_1 = arith.constant 0 : i32
    return %c0_i32, %c0_i32_0 : i32, i32
  }
  func.func @transform_3(%arg0: i32) -> (i32, i32) {
    %c0_i32 = arith.constant 0 : i32
    %c0_i32_0 = arith.constant 0 : i32
    %c0_i32_1 = arith.constant 0 : i32
    return %c0_i32, %c0_i32_0 : i32, i32
  }
  func.func @transform_4(%arg0: i32) -> (i32, i32) {
    %c0_i32 = arith.constant 0 : i32
    %c0_i32_0 = arith.constant 0 : i32
    %c0_i32_1 = arith.constant 0 : i32
    return %c0_i32, %c0_i32_0 : i32, i32
  }
  func.func @transform_5(%arg0: i32) -> (i32, i32) {
    %c0_i32 = arith.constant 0 : i32
    %c0_i32_0 = arith.constant 0 : i32
    %c0_i32_1 = arith.constant 0 : i32
    return %c0_i32, %c0_i32_0 : i32, i32
  }
  func.func @transform_6(%arg0: i32) -> (i32, i32) {
    %c0_i32 = arith.constant 0 : i32
    %c0_i32_0 = arith.constant 0 : i32
    return %arg0, %c0_i32 : i32, i32
  }
}

</mosaic_0001>

<bundles_post_ra>
// kernel: tpu_custom_call.1
= control target key start
LH: loop header
LB: loop body
LE: loop exit
PB: predicated region body
PF: predicated region fallthrough
CT: control target
= control target key end

     0   :  { %11 = vsyncpa [#allocation4], 0  ;;  %s2235_s0 = inlined_call_operand.hbm [shape: bf16[8,16,128], index: 0, kind: input, shape index: {}]   ;;  %s2236_s1 = inlined_call_operand.hbm [shape: bf16[128,256], index: 1, kind: input, shape index: {}]   ;;  %s2237_s2 = inlined_call_operand.hbm [shape: bf16[64,256], index: 2, kind: input, shape index: {}]   ;;  %s2238_s3 = inlined_call_operand.vmem [shape: f32[1,256], index: 3, kind: input, shape index: {}]   ;;  %s2239_s4 = inlined_call_operand.hbm [shape: bf16[64,128], index: 4, kind: input, shape index: {}]   ;;  %s2240_s5 = inlined_call_operand.vmem [shape: f32[1,128], index: 5, kind: input, shape index: {}]   ;;  %s2241_s6 = inlined_call_operand.hbm [shape: f32[16,128], index: 6, kind: output, shape index: {}]  }
   0x1   :  { %12 = vsyncpa [#allocation7], 0 }
   0x2   :  { %13 = vsyncpa [#allocation10], 0 }
   0x3   :  { %14 = vsyncpa [#allocation5], 0  ;;  %s1927_s21 = smov [#allocation6]  }
   0x4   :  { %s32_s22 = sshll.u32 %s1927_s21, 4  ;;  %s33_s22 = int_to_ptr.vmem [resolvable:$true] %s32_s22 }
   0x5   :  { %s1827_s23 = scalar_lea.vmem %s33_s22, 2048  ;;  %p1832_p1 = scmp.lt.s32.totalorder %s33_s22, %s33_s22 }
   0x6   :  { %p1828_p0 = scmp.ne.s32.totalorder %s33_s22, %s1827_s23  ;;  %p1833_p2 = scmp.lt.s32.totalorder %s1827_s23, %s1827_s23 }
   0x8   :  { %p1834_p3 = por %p1833_p2, %p1832_p1 }
   0xa   :  { %p1835_p4 = pnand %p1834_p3, %p1828_p0 }
   0xc   :  { %1838 = shalt.err (!%p1835_p4)
}
   0xd   :  { %s1928_s24 = smov 128   ;;  %s1929_s25 = smov 8  }
   0xe   :  { %38 = dma.hbm_to_vmem [thread:$0]  %s2236_s1, 2048, %s33_s22, [#allocation7], %s1928_s24, %s1928_s24, %s1929_s25  }
   0xf   :  { %s1930_s28 = smov [#allocation3]  }
  0x10   :  { %s20_s29 = sshll.u32 %s1930_s28, 4  ;;  %s21_s29 = int_to_ptr.vmem [resolvable:$true] %s20_s29 }
  0x11   :  { %s1847_s30 = scalar_lea.vmem %s21_s29, 1024  ;;  %p1852_p6 = scmp.lt.s32.totalorder %s21_s29, %s21_s29 }
  0x12   :  { %p1848_p5 = scmp.ne.s32.totalorder %s21_s29, %s1847_s30  ;;  %p1853_p7 = scmp.lt.s32.totalorder %s1847_s30, %s1847_s30 }
  0x14   :  { %p1854_p8 = por %p1853_p7, %p1852_p6 }
  0x16   :  { %p1855_p9 = pnand %p1854_p8, %p1848_p5 }
  0x18   :  { %1858 = shalt.err (!%p1855_p9)
}
  0x19   :  { %s1931_s7 = smov 64   ;;  %s1932_s8 = smov 4  }
  0x1a   :  { %26 = dma.hbm_to_vmem [thread:$0]  %s2235_s0, 1024, %s21_s29, [#allocation4], %s1931_s7, %s1931_s7, %s1932_s8  }
  0x1b   :  { %s1933_s11 = smov [#allocation8]   ;;  %s1934_s12 = smov [#allocation9]  }
  0x1c   :  { %s44_s1 = sshll.u32 %s1933_s11, 4  ;;  %s58_s13 = sshll.u32 %s1934_s12, 4  ;;  %s45_s1 = int_to_ptr.vmem [resolvable:$true] %s44_s1  ;;  %s59_s13 = int_to_ptr.vmem [resolvable:$true] %s58_s13 }
  0x1d   :  { %s1867_s14 = scalar_lea.vmem %s45_s1, 1024  ;;  %p1872_p11 = scmp.lt.s32.totalorder %s45_s1, %s45_s1 }
  0x1e   :  { %p1868_p10 = scmp.ne.s32.totalorder %s45_s1, %s1867_s14  ;;  %p1873_p12 = scmp.lt.s32.totalorder %s1867_s14, %s1867_s14 }
  0x20   :  { %p1874_p13 = por %p1873_p12, %p1872_p11 }
  0x22   :  { %p1875_p0 = pnand %p1874_p13, %p1868_p10 }
  0x24   :  { %1878 = shalt.err (!%p1875_p0)
}
  0x25   :  { %50 = dma.hbm_to_vmem [thread:$0]  %s2237_s2, 1024, %s45_s1, [#allocation7], %s1928_s24, %s1928_s24, %s1929_s25  }
  0x26   :  { %s1887_s0 = scalar_lea.vmem %s59_s13, 512  ;;  %p1892_p2 = scmp.lt.s32.totalorder %s59_s13, %s59_s13 }
  0x27   :  { %p1888_p1 = scmp.ne.s32.totalorder %s59_s13, %s1887_s0  ;;  %p1893_p3 = scmp.lt.s32.totalorder %s1887_s0, %s1887_s0 }
  0x29   :  { %p1894_p4 = por %p1893_p3, %p1892_p2 }
  0x2b   :  { %p1895_p5 = pnand %p1894_p4, %p1888_p1 }
  0x2d   :  { %1898 = shalt.err (!%p1895_p5)
}
  0x2e   :  { %64 = dma.hbm_to_vmem [thread:$0]  %s2239_s4, 512, %s59_s13, [#allocation10], %s1931_s7, %s1931_s7, %s1932_s8  }
  0x2f   :  { %1919 = dma.done.wait [#allocation4], 1024  }
  0x30   :  { %1920 = vsyncadd [#allocation4], 4294966272 }
  0x31   :  { %1921 = dma.done.wait [#allocation7], 3072  }
  0x32   :  { %1922 = vsyncadd [#allocation7], 4294964224 }
  0x33   :  { %1923 = dma.done.wait [#allocation10], 512  }
  0x34   :  { %1924 = vsyncadd [#allocation10], 4294966784  ;;  %v1935_v0 = vmov 0   ;;  %v1575_v1 = vld [vmem:[#allocation6 + $0x74] ss:$8 sps:$4 sm:$0xff]   ;;  %v1611_v25 = vld [vmem:[#allocation3] sm:$0xff]   ;;  %v114_v26 = vlaneseq }
  0x35   :  { %284 = vmatprep.mubr.bf16.mxu0 %v1935_v0  ;;  %567 = vmatprep.mubr.bf16.mxu1 %v1935_v0  ;;  %v1577_v2 = vld [vmem:[#allocation6 + $0x70] ss:$8 sps:$4 sm:$0xff]   ;;  %v1578_v3 = vld [vmem:[#allocation6 + $0x64] ss:$8 sps:$4 sm:$0xff]   ;;  %v1580_v4 = vld [vmem:[#allocation6 + $0x60] ss:$8 sps:$4 sm:$0xff]  }
  0x36   :  { %252 = vmatprep.subr.bf16.mxu0 %v1575_v1  ;;  %v1581_v5 = vld [vmem:[#allocation6 + $0x54] ss:$8 sps:$4 sm:$0xff]   ;;  %v1583_v6 = vld [vmem:[#allocation6 + $0x50] ss:$8 sps:$4 sm:$0xff]   ;;  %v1584_v9 = vld [vmem:[#allocation6 + $0x44] ss:$8 sps:$4 sm:$0xff]  }
  0x37   :  { %253 = vmatpush1.bf16.msra.mxu0 %v1577_v2  ;;  %v1998_v7 = vld [vmem:[#allocation8 + $0x34] ss:$8 sps:$4 sm:$0xff]   ;;  %v2000_v8 = vld [vmem:[#allocation8 + $0x30] ss:$8 sps:$4 sm:$0xff]   ;;  %v2004_v10 = vld [vmem:[#allocation8 + $0x24] ss:$8 sps:$4 sm:$0xff]  }
  0x38   :  { %254 = vmatprep.subr.bf16.mxu0 %v1578_v3  ;;  %543 = vmatprep.subr.bf16.mxu1 %v1998_v7  ;;  %v2006_v11 = vld [vmem:[#allocation8 + $0x20] ss:$8 sps:$4 sm:$0xff]   ;;  %v1587_v13 = vld [vmem:[#allocation6 + $0x34] ss:$8 sps:$4 sm:$0xff]   ;;  %v2012_v15 = vld [vmem:[#allocation8 + $0x10] ss:$8 sps:$4 sm:$0xff]  }
  0x39   :  { %544 = vmatpush1.bf16.msra.mxu1 %v2000_v8  ;;  %v1586_v12 = vld [vmem:[#allocation6 + $0x40] ss:$8 sps:$4 sm:$0xff]   ;;  %v2009_v14 = vld [vmem:[#allocation8 + $0x14] ss:$8 sps:$4 sm:$0xff]   ;;  %v1589_v16 = vld [vmem:[#allocation6 + $0x30] ss:$8 sps:$4 sm:$0xff]  }
  0x3a   :  { %545 = vmatprep.subr.bf16.mxu1 %v2004_v10  ;;  %v2015_v17 = vld [vmem:[#allocation8 + $0x4] ss:$8 sps:$4 sm:$0xff]   ;;  %v1595_v19 = vld [vmem:[#allocation6 + $0x20] ss:$8 sps:$4 sm:$0xff]   ;;  %v1599_v21 = vld [vmem:[#allocation6 + $0x14] ss:$8 sps:$4 sm:$0xff]  }
  0x3b   :  { %255 = vmatpush1.bf16.msra.mxu0 %v1580_v4  ;;  %v1593_v18 = vld [vmem:[#allocation6 + $0x24] ss:$8 sps:$4 sm:$0xff]   ;;  %v2017_v20 = vld [vmem:[#allocation8] ss:$8 sps:$4 sm:$0xff]   ;;  %v1601_v22 = vld [vmem:[#allocation6 + $0x10] ss:$8 sps:$4 sm:$0xff]  }
  0x3c   :  { %256 = vmatprep.subr.bf16.mxu0 %v1581_v5  ;;  %v1605_v23 = vld [vmem:[#allocation6 + $0x4] ss:$8 sps:$4 sm:$0xff]   ;;  %v1607_v24 = vld [vmem:[#allocation6] ss:$8 sps:$4 sm:$0xff]   ;;  %v115_v27 = vshrl.u32 %v114_v26, 7  ;;  %vm531_vm0 = vcmask 523264  }
  0x3d   :  { %546 = vmatpush1.bf16.msra.mxu1 %v2006_v11  ;;  %v112_v30 = vld [vmem:[%s2238_s3] sm:$0x3]  ;;  %v1612_v4 = vld [vmem:[#allocation3 + $0x8] sm:$0xff]   ;;  %vm1937_vm1 = vmmov 0   ;;  %s1938_s20 = smov [#allocation11]  }
  0x3e   :  { %547 = vmatprep.subr.bf16.mxu1 %v2009_v14  ;;  %v116_v28 = vsub.s32 0, %v115_v27  ;;  %v120_v29 = vsub.s32 1, %v115_v27  ;;  %s1423_s21 = sshll.u32 %s1938_s20, 4  ;;  %s1424_s21 = int_to_ptr.vmem [resolvable:$true] %s1423_s21 }
  0x3f   :  { %257 = vmatpush1.bf16.msra.mxu0 %v1583_v6  ;;  %s1899_s22 = scalar_lea.vmem %s1424_s21, 256  ;;  %p1904_p7 = scmp.lt.s32.totalorder %s1424_s21, %s1424_s21 }
  0x40   :  { %258 = vmatprep.subr.bf16.mxu0 %v1584_v9  ;;  %v2046_v31 = vrot.slane %v112_v30, %v116_v28  ;;  %v2048_v32 = vrot.slane %v112_v30, %v120_v29  ;;  %p1900_p6 = scmp.ne.s32.totalorder %s1424_s21, %s1899_s22  ;;  %p1905_p8 = scmp.lt.s32.totalorder %s1899_s22, %s1899_s22 }
  0x41   :  { %548 = vmatpush1.bf16.msra.mxu1 %v2012_v15 }
  0x42   :  { %549 = vmatprep.subr.bf16.mxu1 %v2015_v17  ;;  %p1906_p9 = por %p1905_p8, %p1904_p7 }
  0x43   :  { %259 = vmatpush1.bf16.msra.mxu0 %v1586_v12 }
  0x44   :  { %260 = vmatprep.subr.bf16.mxu0 %v1587_v13  ;;  %p1907_p10 = pnand %p1906_p9, %p1900_p6 }
  0x45   :  { %550 = vmatpush1.bf16.msra.mxu1 %v2017_v20 }
  0x46   :  { %644 = vmatprep.subr.bf16.mxu1 %v1998_v7 }
  0x47   :  { %261 = vmatpush1.bf16.msra.mxu0 %v1589_v16 }
  0x48   :  { %262 = vmatprep.subr.bf16.mxu0 %v1593_v18  ;;  %568 = vmatmul.mubr.bf16.vlgmr.msra.gmra.mxu1 %v1935_v0 }
  0x49   :  { %645 = vmatpush1.bf16.msra.mxu1 %v2000_v8  ;;  %668 = vmatprep.mubr.bf16.mxu1 %v1935_v0 }
  0x4a   :  { %646 = vmatprep.subr.bf16.mxu1 %v2004_v10 }
  0x4b   :  { %263 = vmatpush1.bf16.msra.mxu0 %v1595_v19 }
  0x4c   :  { %264 = vmatprep.subr.bf16.mxu0 %v1599_v21 }
  0x4d   :  { %647 = vmatpush1.bf16.msra.mxu1 %v2006_v11 }
  0x4e   :  { %648 = vmatprep.subr.bf16.mxu1 %v2009_v14 }
  0x4f   :  { %265 = vmatpush1.bf16.msra.mxu0 %v1601_v22 }
  0x50   :  { %266 = vmatprep.subr.bf16.mxu0 %v1605_v23 }
  0x51   :  { %649 = vmatpush1.bf16.msra.mxu1 %v2012_v15 }
  0x52   :  { %650 = vmatprep.subr.bf16.mxu1 %v2015_v17 }
  0x53   :  { %267 = vmatpush1.bf16.msra.mxu0 %v1607_v24 }
  0x54   :  { %1048 = vmatprep.subr.bf16.mxu0 %v1998_v7 }
  0x55   :  { %651 = vmatpush1.bf16.msra.mxu1 %v2017_v20 }
  0x56   :  { %285 = vmatmul.mubr.bf16.vlgmr.msra.gmra.mxu0 %v1611_v25  ;;  %745 = vmatprep.subr.bf16.mxu1 %v1998_v7 }
  0x57   :  { %294 = vmatprep.mubr.bf16.mxu0 %v1935_v0  ;;  %1049 = vmatpush1.bf16.msra.mxu0 %v2000_v8 }
  0x58   :  { %1050 = vmatprep.subr.bf16.mxu0 %v2004_v10 }
  0x5b   :  { %1051 = vmatpush1.bf16.msra.mxu0 %v2006_v11 }
  0x5c   :  { %1052 = vmatprep.subr.bf16.mxu0 %v2009_v14 }
  0x5e   :  { %295 = vmatmul.mubr.bf16.gmra.mxu0 %v1612_v4 }
  0x5f   :  { %1053 = vmatpush1.bf16.msra.mxu0 %v2012_v15  ;;  %304 = vmatprep.mubr.bf16.mxu0 %v1935_v0 }
  0x60   :  { %1054 = vmatprep.subr.bf16.mxu0 %v2015_v17 }
  0x63   :  { %1055 = vmatpush1.bf16.msra.mxu0 %v2017_v20 }
  0x64   :  { %1250 = vmatprep.subr.bf16.mxu0 %v1998_v7 }
 0x108   :  { %v569_v37 = vpop.f32.mrf.mxu1 }
 0x10a   :  { %v571_v44 = vpop.f32.mrf.mxu1 }
 0x10c   :  { %v573_v49 = vpop.f32.mrf.mxu1 }
 0x10e   :  { %v575_v57 = vpop.f32.mrf.mxu1 }
 0x116   :  { %v286_v33 = vpop.f32.mrf.mxu0 }
 0x117   :  { %v287_v35 = vadd.f32 %v286_v33, %v2046_v31 }
 0x118   :  { %v288_v34 = vpop.f32.mrf.mxu0 }
 0x119   :  { %v289_v36 = vadd.f32 %v288_v34, %v2048_v32 }
 0x11a   :  { %v290_v38 = vpop.f32.mrf.mxu0 }
 0x11b   :  { %v1530_v39 = vpack.c.bf16 %v289_v36, %v287_v35  ;;  %v291_v42 = vadd.f32 %v290_v38, %v2046_v31 }
 0x11c   :  { %v292_v40 = vpop.f32.mrf.mxu0 }
 0x11d   :  { %v487_v41 = vunpack.c.l.bf16 %v1530_v39  ;;  %v293_v43 = vadd.f32 %v292_v40, %v2048_v32  ;;  %v488_v52 = vunpack.c.h.bf16 %v1530_v39 }
 0x11e   :  { %v296_v35 = vpop.f32.mrf.mxu0 }
 0x11f   :  { %v570_v45 = vadd.f32 %v569_v37, %v487_v41  ;;  %v1531_v46 = vpack.c.bf16 %v293_v43, %v291_v42  ;;  %v572_v53 = vadd.f32 %v571_v44, %v488_v52  ;;  %v297_v38 = vadd.f32 %v296_v35, %v2046_v31 }
 0x120   :  { %v298_v36 = vpop.f32.mrf.mxu0 }
 0x121   :  { %v1485_v47 = vmul.f32 -1.442695, %v570_v45  ;;  %v489_v48 = vunpack.c.l.bf16 %v1531_v46  ;;  %v490_v54 = vunpack.c.h.bf16 %v1531_v46  ;;  %v1487_v5 = vmul.f32 -1.442695, %v572_v53 }
 0x122   :  { %v300_v37 = vpop.f32.mrf.mxu0  ;;  %v299_v39 = vadd.f32 %v298_v36, %v2048_v32 }
 0x123   :  { %1623 = vpow2.f32 %v1485_v47  ;;  %v574_v50 = vadd.f32 %v573_v49, %v489_v48  ;;  %v576_v58 = vadd.f32 %v575_v57, %v490_v54  ;;  %v301_v42 = vadd.f32 %v300_v37, %v2046_v31 }
 0x124   :  { %v302_v40 = vpop.f32.mrf.mxu0  ;;  %v1532_v41 = vpack.c.bf16 %v299_v39, %v297_v38 }
 0x125   :  { %v1486_v51 = vmul.f32 -1.442695, %v574_v50  ;;  %v1488_v6 = vmul.f32 -1.442695, %v576_v58  ;;  %v303_v43 = vadd.f32 %v302_v40, %v2048_v32 }
 0x126   :  { %v626_v45 = vunpack.c.l.bf16 %v1532_v41  ;;  %v627_v54 = vunpack.c.h.bf16 %v1532_v41 }
 0x127   :  { %1625 = vpow2.f32 %v1486_v51  ;;  %v1533_v44 = vpack.c.bf16 %v303_v43, %v301_v42 }
 0x128   :  { %1627 = vtanh.f32 %v572_v53 }
 0x129   :  { %v628_v50 = vunpack.c.l.bf16 %v1533_v44 }
 0x130   :  { %v1624_v55 = vpop.eup %1623 }
 0x131   :  { %v584_v56 = vadd.f32 1.0, %v1624_v55 }
 0x133   :  { %1629 = vrcp.f32 %v584_v56 }
 0x134   :  { %v1626_v59 = vpop.eup %1625  ;;  %1631 = vtanh.f32 %v576_v58  ;;  %v629_v58 = vunpack.c.h.bf16 %v1533_v44 }
 0x135   :  { %v585_v60 = vadd.f32 1.0, %v1626_v59  ;;  %v1628_v61 = vpop.eup %1627 }
 0x137   :  { %1633 = vrcp.f32 %v585_v60 }
 0x138   :  { %1635 = vpow2.f32 %v1487_v5 }
 0x139   :  { %1637 = vpow2.f32 %v1488_v6  ;;  %v1613_v6 = vld [vmem:[#allocation3 + $0x10] sm:$0xff]  }
 0x13a   :  { %305 = vmatmul.mubr.bf16.gmra.mxu0 %v1613_v6 }
 0x13b   :  { %314 = vmatprep.mubr.bf16.mxu0 %v1935_v0 }
 0x140   :  { %v1630_v62 = vpop.eup %1629 }
 0x141   :  { %v606_v63 = vmul.f32 %v1630_v62, %v1628_v61  ;;  %v1632_v1 = vpop.eup %1631  ;;  %v604_v13 = vmul.f32 0.0, %v1630_v62 }
 0x143   :  { %610 = vrot.lane.b32.xlu0 %v606_v63, %s1931_s7 }
 0x144   :  { %v1634_v2 = vpop.eup %1633 }
 0x145   :  { %v607_v3 = vmul.f32 %v1634_v2, %v1632_v1  ;;  %v1636_v9 = vpop.eup %1635  ;;  %v605_v22 = vmul.f32 0.0, %v1634_v2 }
 0x146   :  { %v1638_v12 = vpop.eup %1637  ;;  %v598_v16 = vadd.f32 1.0, %v1636_v9 }
 0x147   :  { %612 = vrot.lane.b32.xlu0 %v607_v3, %s1931_s7  ;;  %v599_v21 = vadd.f32 1.0, %v1638_v12 }
 0x148   :  { %1639 = vrcp.f32 %v598_v16 }
 0x155   :  { %v1640_v25 = vpop.eup %1639 }
 0x1b5   :  { %v611_v18 = vpop.permute.xlu0 %610 }
 0x1b6   :  { %v2057_v19 = vadd.f32 %v611_v18, %v604_v13 }
 0x1b8   :  { %1641 = vtanh.f32 %v2057_v19 }
 0x1b9   :  { %v613_v23 = vpop.permute.xlu0 %612  ;;  %1643 = vrcp.f32 %v599_v21 }
 0x1ba   :  { %v2060_v24 = vadd.f32 %v613_v23, %v605_v22 }
 0x1bc   :  { %1645 = vtanh.f32 %v2060_v24 }
 0x1c5   :  { %v1642_v26 = vpop.eup %1641 }
 0x1c6   :  { %v1644_v27 = vpop.eup %1643  ;;  %v620_v29 = vmul.f32 %v1642_v26, %v1640_v25 }
 0x1c9   :  { %v1646_v28 = vpop.eup %1645 }
 0x1ca   :  { %v621_v30 = vmul.f32 %v1646_v28, %v1644_v27 }
 0x1cc   :  { %v622_v33 = vpack.c.bf16 %v621_v30, %v620_v29 }
 0x1ce   :  { %631 = vrot.lane.b32.xlu1 %v622_v33, %s1931_s7 }
 0x240   :  { %v632_v34 = vpop.permute.xlu1 %631 }
 0x241   :  { %1489 = vmatmul.mubr.msk.bf16.vlgmr.msra.gmra.mxu1 %vm531_vm0, %v632_v34 }
 0x242   :  { %746 = vmatpush1.bf16.msra.mxu1 %v2000_v8  ;;  %769 = vmatprep.mubr.bf16.mxu1 %v1935_v0 }
 0x243   :  { %747 = vmatprep.subr.bf16.mxu1 %v2004_v10 }
 0x246   :  { %748 = vmatpush1.bf16.msra.mxu1 %v2006_v11 }
 0x247   :  { %749 = vmatprep.subr.bf16.mxu1 %v2009_v14 }
 0x24a   :  { %750 = vmatpush1.bf16.msra.mxu1 %v2012_v15 }
 0x24b   :  { %751 = vmatprep.subr.bf16.mxu1 %v2015_v17 }
 0x24e   :  { %752 = vmatpush1.bf16.msra.mxu1 %v2017_v20 }
 0x24f   :  { %846 = vmatprep.subr.bf16.mxu1 %v1998_v7 }
 0x301   :  { %v670_v46 = vpop.f32.mrf.mxu1 }
 0x302   :  { %v671_v47 = vadd.f32 %v670_v46, %v626_v45 }
 0x303   :  { %v672_v48 = vpop.f32.mrf.mxu1 }
 0x304   :  { %v1490_v49 = vmul.f32 -1.442695, %v671_v47  ;;  %v673_v55 = vadd.f32 %v672_v48, %v627_v54 }
 0x305   :  { %v674_v51 = vpop.f32.mrf.mxu1 }
 0x306   :  { %1647 = vpow2.f32 %v1490_v49  ;;  %v675_v52 = vadd.f32 %v674_v51, %v628_v50  ;;  %v1492_v9 = vmul.f32 -1.442695, %v673_v55 }
 0x307   :  { %v676_v56 = vpop.f32.mrf.mxu1 }
 0x308   :  { %v1491_v53 = vmul.f32 -1.442695, %v675_v52  ;;  %v677_v60 = vadd.f32 %v676_v56, %v629_v58 }
 0x30a   :  { %1649 = vpow2.f32 %v1491_v53  ;;  %v1493_v12 = vmul.f32 -1.442695, %v677_v60 }
 0x30b   :  { %1651 = vtanh.f32 %v673_v55 }
 0x313   :  { %v1648_v57 = vpop.eup %1647 }
 0x314   :  { %v685_v59 = vadd.f32 1.0, %v1648_v57 }
 0x316   :  { %1653 = vrcp.f32 %v685_v59 }
 0x317   :  { %v1650_v61 = vpop.eup %1649  ;;  %1655 = vtanh.f32 %v677_v60 }
 0x318   :  { %v686_v62 = vadd.f32 1.0, %v1650_v61  ;;  %v1652_v63 = vpop.eup %1651 }
 0x31a   :  { %1657 = vrcp.f32 %v686_v62 }
 0x31b   :  { %1659 = vpow2.f32 %v1492_v9 }
 0x31c   :  { %1661 = vpow2.f32 %v1493_v12  ;;  %v1614_v12 = vld [vmem:[#allocation3 + $0x18] sm:$0xff]  }
 0x31d   :  { %315 = vmatmul.mubr.bf16.gmra.mxu0 %v1614_v12 }
 0x31e   :  { %324 = vmatprep.mubr.bf16.mxu0 %v1935_v0 }
 0x323   :  { %v1654_v1 = vpop.eup %1653 }
 0x324   :  { %v707_v2 = vmul.f32 %v1654_v1, %v1652_v63  ;;  %v1656_v3 = vpop.eup %1655  ;;  %v705_v18 = vmul.f32 %v1654_v1, %v2057_v19 }
 0x326   :  { %711 = vrot.lane.b32.xlu1 %v707_v2, %s1931_s7 }
 0x327   :  { %v1658_v4 = vpop.eup %1657 }
 0x328   :  { %v708_v5 = vmul.f32 %v1658_v4, %v1656_v3  ;;  %v1660_v13 = vpop.eup %1659  ;;  %v706_v26 = vmul.f32 %v1658_v4, %v2060_v24  ;;  %v306_v24 = vpop.f32.mrf.mxu0 }
 0x329   :  { %v1662_v16 = vpop.eup %1661  ;;  %v699_v21 = vadd.f32 1.0, %v1660_v13  ;;  %v307_v40 = vadd.f32 %v306_v24, %v2046_v31 }
 0x32a   :  { %713 = vrot.lane.b32.xlu0 %v708_v5, %s1931_s7  ;;  %v700_v25 = vadd.f32 1.0, %v1662_v16  ;;  %v308_v38 = vpop.f32.mrf.mxu0 }
 0x32b   :  { %1663 = vrcp.f32 %v699_v21  ;;  %v309_v41 = vadd.f32 %v308_v38, %v2048_v32 }
 0x32c   :  { %v310_v39 = vpop.f32.mrf.mxu0 }
 0x32d   :  { %v1534_v43 = vpack.c.bf16 %v309_v41, %v307_v40  ;;  %v311_v44 = vadd.f32 %v310_v39, %v2046_v31 }
 0x32e   :  { %v312_v42 = vpop.f32.mrf.mxu0 }
 0x32f   :  { %v313_v45 = vadd.f32 %v312_v42, %v2048_v32  ;;  %v727_v47 = vunpack.c.l.bf16 %v1534_v43  ;;  %v728_v56 = vunpack.c.h.bf16 %v1534_v43 }
 0x331   :  { %v1535_v46 = vpack.c.bf16 %v313_v45, %v311_v44 }
 0x333   :  { %v729_v52 = vunpack.c.l.bf16 %v1535_v46  ;;  %v730_v60 = vunpack.c.h.bf16 %v1535_v46 }
 0x338   :  { %v1664_v29 = vpop.eup %1663 }
 0x398   :  { %v712_v22 = vpop.permute.xlu1 %711 }
 0x399   :  { %v2082_v23 = vadd.f32 %v712_v22, %v705_v18 }
 0x39b   :  { %1665 = vtanh.f32 %v2082_v23 }
 0x39c   :  { %v714_v27 = vpop.permute.xlu0 %713  ;;  %1667 = vrcp.f32 %v700_v25 }
 0x39d   :  { %v2086_v28 = vadd.f32 %v714_v27, %v706_v26 }
 0x39f   :  { %1669 = vtanh.f32 %v2086_v28 }
 0x3a8   :  { %v1666_v30 = vpop.eup %1665 }
 0x3a9   :  { %v1668_v33 = vpop.eup %1667  ;;  %v721_v34 = vmul.f32 %v1666_v30, %v1664_v29 }
 0x3ac   :  { %v1670_v19 = vpop.eup %1669 }
 0x3ad   :  { %v722_v35 = vmul.f32 %v1670_v19, %v1668_v33 }
 0x3af   :  { %v723_v36 = vpack.c.bf16 %v722_v35, %v721_v34 }
 0x3b1   :  { %732 = vrot.lane.b32.xlu1 %v723_v36, %s1931_s7 }
 0x423   :  { %v733_v37 = vpop.permute.xlu1 %732 }
 0x424   :  { %1494 = vmatmul.mubr.msk.bf16.vlgmr.msra.gmra.mxu1 %vm531_vm0, %v733_v37 }
 0x425   :  { %847 = vmatpush1.bf16.msra.mxu1 %v2000_v8  ;;  %870 = vmatprep.mubr.bf16.mxu1 %v1935_v0 }
 0x426   :  { %848 = vmatprep.subr.bf16.mxu1 %v2004_v10 }
 0x429   :  { %849 = vmatpush1.bf16.msra.mxu1 %v2006_v11 }
 0x42a   :  { %850 = vmatprep.subr.bf16.mxu1 %v2009_v14 }
 0x42d   :  { %851 = vmatpush1.bf16.msra.mxu1 %v2012_v15 }
 0x42e   :  { %852 = vmatprep.subr.bf16.mxu1 %v2015_v17 }
 0x431   :  { %853 = vmatpush1.bf16.msra.mxu1 %v2017_v20 }
 0x432   :  { %947 = vmatprep.subr.bf16.mxu1 %v1998_v7 }
 0x4e4   :  { %v771_v48 = vpop.f32.mrf.mxu1 }
 0x4e5   :  { %v772_v49 = vadd.f32 %v771_v48, %v727_v47 }
 0x4e6   :  { %v773_v50 = vpop.f32.mrf.mxu1 }
 0x4e7   :  { %v1495_v51 = vmul.f32 -1.442695, %v772_v49  ;;  %v774_v57 = vadd.f32 %v773_v50, %v728_v56 }
 0x4e8   :  { %v775_v53 = vpop.f32.mrf.mxu1 }
 0x4e9   :  { %1671 = vpow2.f32 %v1495_v51  ;;  %v776_v54 = vadd.f32 %v775_v53, %v729_v52  ;;  %v1497_v13 = vmul.f32 -1.442695, %v774_v57 }
 0x4ea   :  { %v777_v58 = vpop.f32.mrf.mxu1 }
 0x4eb   :  { %v1496_v55 = vmul.f32 -1.442695, %v776_v54  ;;  %v778_v62 = vadd.f32 %v777_v58, %v730_v60 }
 0x4ed   :  { %1673 = vpow2.f32 %v1496_v55  ;;  %v1498_v16 = vmul.f32 -1.442695, %v778_v62 }
 0x4ee   :  { %1675 = vtanh.f32 %v774_v57 }
 0x4f6   :  { %v1672_v59 = vpop.eup %1671 }
 0x4f7   :  { %v786_v61 = vadd.f32 1.0, %v1672_v59 }
 0x4f9   :  { %1677 = vrcp.f32 %v786_v61 }
 0x4fa   :  { %v1674_v63 = vpop.eup %1673  ;;  %1679 = vtanh.f32 %v778_v62 }
 0x4fb   :  { %v787_v1 = vadd.f32 1.0, %v1674_v63  ;;  %v1676_v2 = vpop.eup %1675 }
 0x4fd   :  { %1681 = vrcp.f32 %v787_v1 }
 0x4fe   :  { %1683 = vpow2.f32 %v1497_v13  ;;  %v1615_v13 = vld [vmem:[#allocation3 + $0x20] sm:$0xff]  }
 0x4ff   :  { %1685 = vpow2.f32 %v1498_v16  ;;  %325 = vmatmul.mubr.bf16.gmra.mxu0 %v1615_v13 }
 0x500   :  { %334 = vmatprep.mubr.bf16.mxu0 %v1935_v0 }
 0x506   :  { %v1678_v3 = vpop.eup %1677 }
 0x507   :  { %v808_v4 = vmul.f32 %v1678_v3, %v1676_v2  ;;  %v1680_v5 = vpop.eup %1679  ;;  %v806_v22 = vmul.f32 %v1678_v3, %v2082_v23 }
 0x509   :  { %812 = vrot.lane.b32.xlu0 %v808_v4, %s1931_s7 }
 0x50a   :  { %v1682_v6 = vpop.eup %1681 }
 0x50b   :  { %v809_v9 = vmul.f32 %v1682_v6, %v1680_v5  ;;  %v1684_v18 = vpop.eup %1683  ;;  %v807_v30 = vmul.f32 %v1682_v6, %v2086_v28  ;;  %v316_v28 = vpop.f32.mrf.mxu0 }
 0x50c   :  { %v1686_v21 = vpop.eup %1685  ;;  %v800_v25 = vadd.f32 1.0, %v1684_v18  ;;  %v317_v42 = vadd.f32 %v316_v28, %v2046_v31 }
 0x50d   :  { %814 = vrot.lane.b32.xlu1 %v809_v9, %s1931_s7  ;;  %v801_v29 = vadd.f32 1.0, %v1686_v21  ;;  %v318_v40 = vpop.f32.mrf.mxu0 }
 0x50e   :  { %1687 = vrcp.f32 %v800_v25  ;;  %v319_v43 = vadd.f32 %v318_v40, %v2048_v32 }
 0x50f   :  { %v320_v41 = vpop.f32.mrf.mxu0 }
 0x510   :  { %v1536_v45 = vpack.c.bf16 %v319_v43, %v317_v42  ;;  %v321_v46 = vadd.f32 %v320_v41, %v2046_v31 }
 0x511   :  { %v322_v44 = vpop.f32.mrf.mxu0 }
 0x512   :  { %v323_v47 = vadd.f32 %v322_v44, %v2048_v32  ;;  %v828_v49 = vunpack.c.l.bf16 %v1536_v45  ;;  %v829_v57 = vunpack.c.h.bf16 %v1536_v45 }
 0x514   :  { %v1537_v48 = vpack.c.bf16 %v323_v47, %v321_v46 }
 0x516   :  { %v831_v61 = vunpack.c.h.bf16 %v1537_v48 }
 0x51b   :  { %v1688_v34 = vpop.eup %1687 }
 0x57b   :  { %v813_v26 = vpop.permute.xlu0 %812 }
 0x57c   :  { %v2108_v27 = vadd.f32 %v813_v26, %v806_v22 }
 0x57e   :  { %1689 = vtanh.f32 %v2108_v27 }
 0x57f   :  { %v815_v33 = vpop.permute.xlu1 %814  ;;  %1691 = vrcp.f32 %v801_v29 }
 0x580   :  { %v2112_v19 = vadd.f32 %v815_v33, %v807_v30 }
 0x582   :  { %1693 = vtanh.f32 %v2112_v19 }
 0x58b   :  { %v1690_v35 = vpop.eup %1689 }
 0x58c   :  { %v1692_v36 = vpop.eup %1691  ;;  %v822_v37 = vmul.f32 %v1690_v35, %v1688_v34 }
 0x58f   :  { %v1694_v23 = vpop.eup %1693 }
 0x590   :  { %v823_v24 = vmul.f32 %v1694_v23, %v1692_v36 }
 0x592   :  { %v824_v38 = vpack.c.bf16 %v823_v24, %v822_v37 }
 0x594   :  { %833 = vrot.lane.b32.xlu0 %v824_v38, %s1931_s7 }
 0x606   :  { %v834_v39 = vpop.permute.xlu0 %833 }
 0x607   :  { %1499 = vmatmul.mubr.msk.bf16.vlgmr.msra.gmra.mxu1 %vm531_vm0, %v834_v39 }
 0x608   :  { %948 = vmatpush1.bf16.msra.mxu1 %v2000_v8  ;;  %971 = vmatprep.mubr.bf16.mxu1 %v1935_v0 }
 0x609   :  { %949 = vmatprep.subr.bf16.mxu1 %v2004_v10 }
 0x60c   :  { %950 = vmatpush1.bf16.msra.mxu1 %v2006_v11 }
 0x60d   :  { %951 = vmatprep.subr.bf16.mxu1 %v2009_v14 }
 0x610   :  { %952 = vmatpush1.bf16.msra.mxu1 %v2012_v15 }
 0x611   :  { %953 = vmatprep.subr.bf16.mxu1 %v2015_v17 }
 0x614   :  { %954 = vmatpush1.bf16.msra.mxu1 %v2017_v20 }
 0x615   :  { %1149 = vmatprep.subr.bf16.mxu1 %v1998_v7  ;;  %v830_v7 = vunpack.c.l.bf16 %v1537_v48 }
 0x6c7   :  { %v872_v50 = vpop.f32.mrf.mxu1 }
 0x6c8   :  { %v873_v51 = vadd.f32 %v872_v50, %v828_v49 }
 0x6c9   :  { %v874_v52 = vpop.f32.mrf.mxu1 }
 0x6ca   :  { %v1500_v53 = vmul.f32 -1.442695, %v873_v51  ;;  %v875_v58 = vadd.f32 %v874_v52, %v829_v57 }
 0x6cb   :  { %v876_v54 = vpop.f32.mrf.mxu1 }
 0x6cc   :  { %1695 = vpow2.f32 %v1500_v53  ;;  %v877_v55 = vadd.f32 %v876_v54, %v830_v7  ;;  %v1502_v16 = vmul.f32 -1.442695, %v875_v58 }
 0x6cd   :  { %v878_v59 = vpop.f32.mrf.mxu1 }
 0x6ce   :  { %v1501_v56 = vmul.f32 -1.442695, %v877_v55  ;;  %v879_v63 = vadd.f32 %v878_v59, %v831_v61 }
 0x6d0   :  { %1697 = vpow2.f32 %v1501_v56  ;;  %v1503_v18 = vmul.f32 -1.442695, %v879_v63 }
 0x6d1   :  { %1699 = vtanh.f32 %v875_v58 }
 0x6d9   :  { %v1696_v60 = vpop.eup %1695 }
 0x6da   :  { %v887_v62 = vadd.f32 1.0, %v1696_v60 }
 0x6dc   :  { %1701 = vrcp.f32 %v887_v62 }
 0x6dd   :  { %v1698_v1 = vpop.eup %1697  ;;  %1703 = vtanh.f32 %v879_v63 }
 0x6de   :  { %v888_v2 = vadd.f32 1.0, %v1698_v1  ;;  %v1700_v3 = vpop.eup %1699 }
 0x6e0   :  { %1705 = vrcp.f32 %v888_v2 }
 0x6e1   :  { %1707 = vpow2.f32 %v1502_v16 }
 0x6e2   :  { %1709 = vpow2.f32 %v1503_v18 }
 0x6e9   :  { %v1702_v4 = vpop.eup %1701 }
 0x6ea   :  { %v909_v5 = vmul.f32 %v1702_v4, %v1700_v3  ;;  %v1704_v6 = vpop.eup %1703  ;;  %v907_v25 = vmul.f32 %v1702_v4, %v2108_v27 }
 0x6ec   :  { %913 = vrot.lane.b32.xlu1 %v909_v5, %s1931_s7 }
 0x6ed   :  { %v1706_v9 = vpop.eup %1705 }
 0x6ee   :  { %v910_v12 = vmul.f32 %v1706_v9, %v1704_v6  ;;  %v1708_v21 = vpop.eup %1707  ;;  %v908_v34 = vmul.f32 %v1706_v9, %v2112_v19  ;;  %v326_v19 = vpop.f32.mrf.mxu0  ;;  %v1616_v6 = vld [vmem:[#allocation3 + $0x28] sm:$0xff]   ;;  %v1617_v9 = vld [vmem:[#allocation3 + $0x30] sm:$0xff]  }
 0x6ef   :  { %v1710_v22 = vpop.eup %1709  ;;  %v901_v26 = vadd.f32 1.0, %v1708_v21  ;;  %v327_v43 = vadd.f32 %v326_v19, %v2046_v31  ;;  %335 = vmatmul.mubr.bf16.gmra.mxu0 %v1616_v6 }
 0x6f0   :  { %915 = vrot.lane.b32.xlu0 %v910_v12, %s1931_s7  ;;  %v902_v33 = vadd.f32 1.0, %v1710_v22  ;;  %v328_v41 = vpop.f32.mrf.mxu0  ;;  %344 = vmatprep.mubr.bf16.mxu0 %v1935_v0  ;;  %v1618_v12 = vld [vmem:[#allocation3 + $0x38] sm:$0xff]  }
 0x6f1   :  { %1711 = vrcp.f32 %v901_v26 }
 0x6f2   :  { %v330_v42 = vpop.f32.mrf.mxu0 }
 0x6f4   :  { %v332_v44 = vpop.f32.mrf.mxu0 }
 0x6f7   :  { %345 = vmatmul.mubr.bf16.gmra.mxu0 %v1617_v9 }
 0x6f8   :  { %354 = vmatprep.mubr.bf16.mxu0 %v1935_v0 }
 0x6fe   :  { %v1712_v23 = vpop.eup %1711 }
 0x6ff   :  { %355 = vmatmul.mubr.bf16.gmra.mxu0 %v1618_v12 }
 0x700   :  { %1072 = vmatprep.mubr.bf16.mxu0 %v1935_v0 }
 0x75e   :  { %v914_v29 = vpop.permute.xlu1 %913 }
 0x75f   :  { %v2134_v30 = vadd.f32 %v914_v29, %v907_v25 }
 0x761   :  { %1713 = vtanh.f32 %v2134_v30 }
 0x762   :  { %v916_v35 = vpop.permute.xlu0 %915  ;;  %1715 = vrcp.f32 %v902_v33 }
 0x763   :  { %v2138_v36 = vadd.f32 %v916_v35, %v908_v34 }
 0x765   :  { %1717 = vtanh.f32 %v2138_v36 }
 0x76e   :  { %v1714_v37 = vpop.eup %1713 }
 0x76f   :  { %v1716_v24 = vpop.eup %1715  ;;  %v923_v38 = vmul.f32 %v1714_v37, %v1712_v23 }
 0x772   :  { %v1718_v27 = vpop.eup %1717 }
 0x773   :  { %v924_v39 = vmul.f32 %v1718_v27, %v1716_v24 }
 0x775   :  { %v925_v28 = vpack.c.bf16 %v924_v39, %v923_v38 }
 0x777   :  { %934 = vrot.lane.b32.xlu1 %v925_v28, %s1931_s7 }
 0x7e9   :  { %v935_v40 = vpop.permute.xlu1 %934 }
 0x7ea   :  { %1504 = vmatmul.mubr.msk.bf16.vlgmr.msra.gmra.mxu1 %vm531_vm0, %v935_v40  ;;  %v336_v40 = vpop.f32.mrf.mxu0 }
 0x7eb   :  { %1150 = vmatpush1.bf16.msra.mxu1 %v2000_v8  ;;  %1173 = vmatprep.mubr.bf16.mxu1 %v1935_v0  ;;  %v329_v8 = vadd.f32 %v328_v41, %v2048_v32 }
 0x7ec   :  { %1151 = vmatprep.subr.bf16.mxu1 %v2004_v10  ;;  %v331_v10 = vadd.f32 %v330_v42, %v2046_v31 }
 0x7ed   :  { %v1538_v45 = vpack.c.bf16 %v329_v8, %v327_v43 }
 0x7ef   :  { %1152 = vmatpush1.bf16.msra.mxu1 %v2006_v11  ;;  %v333_v11 = vadd.f32 %v332_v44, %v2048_v32  ;;  %v929_v46 = vunpack.c.l.bf16 %v1538_v45  ;;  %v930_v54 = vunpack.c.h.bf16 %v1538_v45 }
 0x7f0   :  { %1153 = vmatprep.subr.bf16.mxu1 %v2009_v14 }
 0x7f1   :  { %v1539_v14 = vpack.c.bf16 %v333_v11, %v331_v10 }
 0x7f3   :  { %1154 = vmatpush1.bf16.msra.mxu1 %v2012_v15  ;;  %v931_v51 = vunpack.c.l.bf16 %v1539_v14  ;;  %v932_v58 = vunpack.c.h.bf16 %v1539_v14 }
 0x7f4   :  { %1155 = vmatprep.subr.bf16.mxu1 %v2015_v17 }
 0x7f7   :  { %1156 = vmatpush1.bf16.msra.mxu1 %v2017_v20 }
 0x8aa   :  { %v973_v47 = vpop.f32.mrf.mxu1 }
 0x8ab   :  { %v974_v48 = vadd.f32 %v973_v47, %v929_v46 }
 0x8ac   :  { %v975_v49 = vpop.f32.mrf.mxu1 }
 0x8ad   :  { %v1505_v50 = vmul.f32 -1.442695, %v974_v48  ;;  %v976_v55 = vadd.f32 %v975_v49, %v930_v54  ;;  %v1816_v54 = vld [vmem:[#allocation8 + $0x24] ss:$8 sps:$4 sm:$0xff]  }
 0x8ae   :  { %v977_v52 = vpop.f32.mrf.mxu1 }
 0x8af   :  { %1719 = vpow2.f32 %v1505_v50  ;;  %v978_v53 = vadd.f32 %v977_v52, %v931_v51  ;;  %v1507_v13 = vmul.f32 -1.442695, %v976_v55 }
 0x8b0   :  { %v979_v56 = vpop.f32.mrf.mxu1 }
 0x8b1   :  { %v1506_v7 = vmul.f32 -1.442695, %v978_v53  ;;  %v980_v60 = vadd.f32 %v979_v56, %v932_v58  ;;  %v1818_v56 = vld [vmem:[#allocation8 + $0x14] ss:$8 sps:$4 sm:$0xff]  }
 0x8b3   :  { %1721 = vpow2.f32 %v1506_v7  ;;  %v1508_v16 = vmul.f32 -1.442695, %v980_v60  ;;  %v1815_v7 = vld [vmem:[#allocation8 + $0x30] ss:$8 sps:$4 sm:$0xff]  }
 0x8b4   :  { %1723 = vtanh.f32 %v976_v55  ;;  %v1817_v55 = vld [vmem:[#allocation8 + $0x20] ss:$8 sps:$4 sm:$0xff]  }
 0x8bc   :  { %v1720_v57 = vpop.eup %1719 }
 0x8bd   :  { %v988_v59 = vadd.f32 1.0, %v1720_v57  ;;  %v337_v57 = vadd.f32 %v336_v40, %v2046_v31 }
 0x8bf   :  { %1725 = vrcp.f32 %v988_v59 }
 0x8c0   :  { %v1722_v61 = vpop.eup %1721  ;;  %1727 = vtanh.f32 %v980_v60 }
 0x8c1   :  { %v989_v62 = vadd.f32 1.0, %v1722_v61  ;;  %v1724_v63 = vpop.eup %1723 }
 0x8c3   :  { %1729 = vrcp.f32 %v989_v62 }
 0x8c4   :  { %1731 = vpow2.f32 %v1507_v13 }
 0x8c5   :  { %1733 = vpow2.f32 %v1508_v16 }
 0x8cc   :  { %v1726_v1 = vpop.eup %1725 }
 0x8cd   :  { %v1010_v2 = vmul.f32 %v1726_v1, %v1724_v63  ;;  %v1728_v3 = vpop.eup %1727  ;;  %v1008_v22 = vmul.f32 %v1726_v1, %v2134_v30 }
 0x8cf   :  { %1014 = vrot.lane.b32.xlu0 %v1010_v2, %s1931_s7 }
 0x8d0   :  { %v1730_v4 = vpop.eup %1729 }
 0x8d1   :  { %v1011_v5 = vmul.f32 %v1730_v4, %v1728_v3  ;;  %v1732_v18 = vpop.eup %1731  ;;  %v1009_v34 = vmul.f32 %v1730_v4, %v2138_v36  ;;  %v338_v36 = vpop.f32.mrf.mxu0 }
 0x8d2   :  { %v1734_v21 = vpop.eup %1733  ;;  %v1002_v25 = vadd.f32 1.0, %v1732_v18  ;;  %v339_v58 = vadd.f32 %v338_v36, %v2048_v32 }
 0x8d3   :  { %1016 = vrot.lane.b32.xlu1 %v1011_v5, %s1931_s7  ;;  %v1003_v33 = vadd.f32 1.0, %v1734_v21  ;;  %v340_v19 = vpop.f32.mrf.mxu0 }
 0x8d4   :  { %1735 = vrcp.f32 %v1002_v25  ;;  %v1540_v60 = vpack.c.bf16 %v339_v58, %v337_v57 }
 0x8d5   :  { %v342_v41 = vpop.f32.mrf.mxu0 }
 0x8d6   :  { %v343_v61 = vadd.f32 %v342_v41, %v2048_v32  ;;  %v1030_v1 = vunpack.c.l.bf16 %v1540_v60  ;;  %v1031_v9 = vunpack.c.h.bf16 %v1540_v60 }
 0x8d7   :  { %v346_v42 = vpop.f32.mrf.mxu0 }
 0x8d8   :  { %v347_v43 = vadd.f32 %v346_v42, %v2046_v31 }
 0x8d9   :  { %v348_v8 = vpop.f32.mrf.mxu0 }
 0x8da   :  { %v349_v44 = vadd.f32 %v348_v8, %v2048_v32 }
 0x8db   :  { %v350_v45 = vpop.f32.mrf.mxu0 }
 0x8dc   :  { %v2171_v10 = vpack.c.bf16 %v349_v44, %v347_v43  ;;  %v351_v11 = vadd.f32 %v350_v45, %v2046_v31 }
 0x8dd   :  { %v352_v14 = vpop.f32.mrf.mxu0 }
 0x8de   :  { %v353_v46 = vadd.f32 %v352_v14, %v2048_v32  ;;  %v1132_v60 = vunpack.c.h.bf16 %v2171_v10 }
 0x8df   :  { %v356_v47 = vpop.f32.mrf.mxu0 }
 0x8e0   :  { %v2175_v48 = vpack.c.bf16 %v353_v46, %v351_v11  ;;  %v357_v49 = vadd.f32 %v356_v47, %v2046_v31 }
 0x8e1   :  { %v1736_v37 = vpop.eup %1735  ;;  %v358_v50 = vpop.f32.mrf.mxu0 }
 0x8e2   :  { %v359_v51 = vadd.f32 %v358_v50, %v2048_v32 }
 0x8e3   :  { %v2188_v59 = vpop.f32.mrf.mxu0 }
 0x8e4   :  { %v2179_v52 = vpack.c.bf16 %v359_v51, %v357_v49 }
 0x8e5   :  { %v2192_v62 = vpop.f32.mrf.mxu0 }
 0x941   :  { %v1015_v26 = vpop.permute.xlu0 %1014 }
 0x942   :  { %v2161_v29 = vadd.f32 %v1015_v26, %v1008_v22 }
 0x944   :  { %1737 = vtanh.f32 %v2161_v29 }
 0x945   :  { %v1017_v35 = vpop.permute.xlu1 %1016  ;;  %1739 = vrcp.f32 %v1003_v33 }
 0x946   :  { %v2165_v23 = vadd.f32 %v1017_v35, %v1009_v34 }
 0x948   :  { %1741 = vtanh.f32 %v2165_v23 }
 0x951   :  { %v1738_v24 = vpop.eup %1737 }
 0x952   :  { %v1740_v27 = vpop.eup %1739  ;;  %v1024_v38 = vmul.f32 %v1738_v24, %v1736_v37 }
 0x955   :  { %v1742_v30 = vpop.eup %1741 }
 0x956   :  { %v1025_v39 = vmul.f32 %v1742_v30, %v1740_v27 }
 0x958   :  { %v1026_v28 = vpack.c.bf16 %v1025_v39, %v1024_v38 }
 0x95a   :  { %1035 = vrot.lane.b32.xlu0 %v1026_v28, %s1931_s7 }
 0x9cc   :  { %v1036_v53 = vpop.permute.xlu0 %1035 }
 0x9cd   :  { %1509 = vmatmul.mubr.msk.bf16.vlgmr.msra.gmra.mxu0 %vm531_vm0, %v1036_v53 }
 0x9ce   :  { %1251 = vmatpush1.bf16.msra.mxu0 %v1815_v7  ;;  %1274 = vmatprep.mubr.bf16.mxu0 %v1935_v0  ;;  %v341_v0 = vadd.f32 %v340_v19, %v2046_v31 }
 0x9cf   :  { %1252 = vmatprep.subr.bf16.mxu0 %v1816_v54 }
 0x9d0   :  { %v1541_v63 = vpack.c.bf16 %v343_v61, %v341_v0 }
 0x9d2   :  { %1253 = vmatpush1.bf16.msra.mxu0 %v1817_v55  ;;  %v1033_v18 = vunpack.c.h.bf16 %v1541_v63  ;;  %v1133_v55 = vunpack.c.l.bf16 %v2175_v48 }
 0x9d3   :  { %1254 = vmatprep.subr.bf16.mxu0 %v1818_v56 }
 0x9d6   :  { %1255 = vmatpush1.bf16.msra.mxu0 %v2012_v15 }
 0x9d7   :  { %1256 = vmatprep.subr.bf16.mxu0 %v2015_v17 }
 0x9da   :  { %1257 = vmatpush1.bf16.msra.mxu0 %v2017_v20  ;;  %v1032_v20 = vunpack.c.l.bf16 %v1541_v63 }
 0xa8d   :  { %v1074_v15 = vpop.f32.mrf.mxu0 }
 0xa8e   :  { %v1075_v2 = vadd.f32 %v1074_v15, %v1030_v1  ;;  %v1134_v1 = vunpack.c.h.bf16 %v2175_v48 }
 0xa8f   :  { %v1076_v17 = vpop.f32.mrf.mxu0 }
 0xa90   :  { %v1510_v3 = vmul.f32 -1.442695, %v1075_v2  ;;  %v1077_v12 = vadd.f32 %v1076_v17, %v1031_v9 }
 0xa91   :  { %v1078_v4 = vpop.f32.mrf.mxu0 }
 0xa92   :  { %1743 = vpow2.f32 %v1510_v3  ;;  %v1079_v5 = vadd.f32 %v1078_v4, %v1032_v20  ;;  %v1512_v30 = vmul.f32 -1.442695, %v1077_v12 }
 0xa93   :  { %v1080_v13 = vpop.f32.mrf.mxu0 }
 0xa94   :  { %v1511_v6 = vmul.f32 -1.442695, %v1079_v5  ;;  %v1081_v22 = vadd.f32 %v1080_v13, %v1033_v18 }
 0xa96   :  { %1745 = vpow2.f32 %v1511_v6  ;;  %v1513_v38 = vmul.f32 -1.442695, %v1081_v22 }
 0xa97   :  { %1747 = vtanh.f32 %v1077_v12 }
 0xa9f   :  { %v1744_v16 = vpop.eup %1743 }
 0xaa0   :  { %v1089_v21 = vadd.f32 1.0, %v1744_v16 }
 0xaa2   :  { %1749 = vrcp.f32 %v1089_v21 }
 0xaa3   :  { %v1746_v25 = vpop.eup %1745  ;;  %1751 = vtanh.f32 %v1081_v22 }
 0xaa4   :  { %v1090_v26 = vadd.f32 1.0, %v1746_v25  ;;  %v1748_v33 = vpop.eup %1747 }
 0xaa6   :  { %1753 = vrcp.f32 %v1090_v26 }
 0xaa7   :  { %1755 = vpow2.f32 %v1512_v30 }
 0xaa8   :  { %1757 = vpow2.f32 %v1513_v38 }
 0xaaf   :  { %v1750_v34 = vpop.eup %1749 }
 0xab0   :  { %v1111_v35 = vmul.f32 %v1750_v34, %v1748_v33  ;;  %v1752_v37 = vpop.eup %1751  ;;  %v1109_v40 = vmul.f32 %v1750_v34, %v2161_v29 }
 0xab2   :  { %1115 = vrot.lane.b32.xlu1 %v1111_v35, %s1931_s7 }
 0xab3   :  { %v1754_v24 = vpop.eup %1753 }
 0xab4   :  { %v1112_v27 = vmul.f32 %v1754_v24, %v1752_v37  ;;  %v1756_v39 = vpop.eup %1755  ;;  %v1110_v43 = vmul.f32 %v1754_v24, %v2165_v23  ;;  %v1131_v23 = vunpack.c.l.bf16 %v2171_v10 }
 0xab5   :  { %v1758_v28 = vpop.eup %1757  ;;  %v1103_v36 = vadd.f32 1.0, %v1756_v39 }
 0xab6   :  { %1117 = vrot.lane.b32.xlu0 %v1112_v27, %s1931_s7  ;;  %v1104_v42 = vadd.f32 1.0, %v1758_v28 }
 0xab7   :  { %1759 = vrcp.f32 %v1103_v36  ;;  %v361_v36 = vadd.f32 %v2188_v59, %v2046_v31 }
 0xac4   :  { %v1760_v45 = vpop.eup %1759 }
 0xb24   :  { %v1116_v19 = vpop.permute.xlu1 %1115 }
 0xb25   :  { %v1121_v41 = vadd.f32 %v1116_v19, %v1109_v40  ;;  %v363_v19 = vadd.f32 %v2192_v62, %v2048_v32 }
 0xb27   :  { %1761 = vtanh.f32 %v1121_v41 }
 0xb28   :  { %v1118_v8 = vpop.permute.xlu0 %1117  ;;  %1763 = vrcp.f32 %v1104_v42  ;;  %v1232_v42 = vunpack.c.l.bf16 %v2179_v52 }
 0xb29   :  { %v1122_v44 = vadd.f32 %v1118_v8, %v1110_v43 }
 0xb2b   :  { %1765 = vtanh.f32 %v1122_v44 }
 0xb34   :  { %v1762_v11 = vpop.eup %1761 }
 0xb35   :  { %v1764_v14 = vpop.eup %1763  ;;  %v1125_v47 = vmul.f32 %v1762_v11, %v1760_v45 }
 0xb38   :  { %v1766_v46 = vpop.eup %1765 }
 0xb39   :  { %v1126_v49 = vmul.f32 %v1766_v46, %v1764_v14 }
 0xb3b   :  { %v1127_v50 = vpack.c.bf16 %v1126_v49, %v1125_v47  ;;  %v1233_v49 = vunpack.c.h.bf16 %v2179_v52 }
 0xb3d   :  { %1136 = vrot.lane.b32.xlu1 %v1127_v50, %s1931_s7 }
 0xbaf   :  { %v1137_v29 = vpop.permute.xlu1 %1136 }
 0xbb0   :  { %1514 = vmatmul.mubr.msk.bf16.vlgmr.msra.gmra.mxu1 %vm531_vm0, %v1137_v29 }
 0xc70   :  { %v1175_v51 = vpop.f32.mrf.mxu1 }
 0xc71   :  { %v1176_v53 = vadd.f32 %v1175_v51, %v1131_v23 }
 0xc72   :  { %v1177_v7 = vpop.f32.mrf.mxu1 }
 0xc73   :  { %v1515_v54 = vmul.f32 -1.442695, %v1176_v53  ;;  %v1178_v0 = vadd.f32 %v1177_v7, %v1132_v60  ;;  %v1620_v60 = vld [vmem:[#allocation9 + $0x10] sm:$0xff]  }
 0xc74   :  { %v1179_v56 = vpop.f32.mrf.mxu1 }
 0xc75   :  { %1767 = vpow2.f32 %v1515_v54  ;;  %v1180_v57 = vadd.f32 %v1179_v56, %v1133_v55  ;;  %v1517_v12 = vmul.f32 -1.442695, %v1178_v0 }
 0xc76   :  { %v1181_v61 = vpop.f32.mrf.mxu1 }
 0xc77   :  { %v1516_v58 = vmul.f32 -1.442695, %v1180_v57  ;;  %v1182_v2 = vadd.f32 %v1181_v61, %v1134_v1  ;;  %v1619_v57 = vld [vmem:[#allocation9 + $0x18] sm:$0xff]   ;;  %v1622_v61 = vld [vmem:[#allocation9] sm:$0xff]  }
 0xc79   :  { %1769 = vpow2.f32 %v1516_v58  ;;  %v1518_v48 = vmul.f32 -1.442695, %v1182_v2  ;;  %v1936_v58 = vmov 0.0  }
 0xc7a   :  { %1771 = vtanh.f32 %v1178_v0  ;;  %1551 = vmatprep.subr.bf16.mxu1 %v1936_v58  ;;  %1559 = vmatprep.mubr.msk.bf16.mxu1 %vm1937_vm1, %v1936_v58  ;;  %v1621_v0 = vld [vmem:[#allocation9 + $0x8] sm:$0xff]  }
 0xc7b   :  { %1552 = vmatpush3.bf16.msra.mxu1 %v1619_v57 }
 0xc7c   :  { %1553 = vmatprep.subr.bf16.mxu1 %v1936_v58 }
 0xc7f   :  { %1554 = vmatpush3.bf16.msra.mxu1 %v1620_v60 }
 0xc80   :  { %1555 = vmatprep.subr.bf16.mxu1 %v1936_v58 }
 0xc82   :  { %v1768_v63 = vpop.eup %1767 }
 0xc83   :  { %v1190_v15 = vadd.f32 1.0, %v1768_v63  ;;  %1556 = vmatpush3.bf16.msra.mxu1 %v1621_v0 }
 0xc84   :  { %1557 = vmatprep.subr.bf16.mxu1 %v1936_v58 }
 0xc85   :  { %1773 = vrcp.f32 %v1190_v15 }
 0xc86   :  { %v1770_v17 = vpop.eup %1769  ;;  %1775 = vtanh.f32 %v1182_v2 }
 0xc87   :  { %v1191_v3 = vadd.f32 1.0, %v1770_v17  ;;  %v1772_v20 = vpop.eup %1771  ;;  %1558 = vmatpush3.bf16.msra.mxu1 %v1622_v61 }
 0xc89   :  { %1777 = vrcp.f32 %v1191_v3 }
 0xc8a   :  { %1779 = vpow2.f32 %v1517_v12 }
 0xc8b   :  { %1781 = vpow2.f32 %v1518_v48 }
 0xc92   :  { %v1774_v4 = vpop.eup %1773 }
 0xc93   :  { %v1212_v5 = vmul.f32 %v1774_v4, %v1772_v20  ;;  %v1776_v6 = vpop.eup %1775  ;;  %v1210_v18 = vmul.f32 %v1774_v4, %v1121_v41  ;;  %v1545_v41 = vpack.c.bf16 %v363_v19, %v361_v36 }
 0xc95   :  { %1216 = vrot.lane.b32.xlu0 %v1212_v5, %s1931_s7  ;;  %v1234_v11 = vunpack.c.l.bf16 %v1545_v41  ;;  %v1235_v29 = vunpack.c.h.bf16 %v1545_v41 }
 0xc96   :  { %v1778_v10 = vpop.eup %1777 }
 0xc97   :  { %v1213_v9 = vmul.f32 %v1778_v10, %v1776_v6  ;;  %v1780_v13 = vpop.eup %1779  ;;  %v1211_v33 = vmul.f32 %v1778_v10, %v1122_v44 }
 0xc98   :  { %v1782_v16 = vpop.eup %1781  ;;  %v1204_v21 = vadd.f32 1.0, %v1780_v13 }
 0xc99   :  { %1218 = vrot.lane.b32.xlu1 %v1213_v9, %s1931_s7  ;;  %v1205_v26 = vadd.f32 1.0, %v1782_v16 }
 0xc9a   :  { %1783 = vrcp.f32 %v1204_v21 }
 0xca7   :  { %v1784_v37 = vpop.eup %1783 }
 0xd07   :  { %v1217_v22 = vpop.permute.xlu0 %1216 }
 0xd08   :  { %v2206_v25 = vadd.f32 %v1217_v22, %v1210_v18 }
 0xd0a   :  { %1785 = vtanh.f32 %v2206_v25 }
 0xd0b   :  { %v1219_v34 = vpop.permute.xlu1 %1218  ;;  %1787 = vrcp.f32 %v1205_v26  ;;  %v1524_v26 = vld [vmem:[%s2240_s5] ss:$0 sm:$0xff] }
 0xd0c   :  { %v2209_v35 = vadd.f32 %v1219_v34, %v1211_v33 }
 0xd0e   :  { %1789 = vtanh.f32 %v2209_v35 }
 0xd17   :  { %v1786_v24 = vpop.eup %1785 }
 0xd18   :  { %v1788_v27 = vpop.eup %1787  ;;  %v1226_v38 = vmul.f32 %v1786_v24, %v1784_v37 }
 0xd1b   :  { %v1790_v30 = vpop.eup %1789 }
 0xd1c   :  { %v1227_v39 = vmul.f32 %v1790_v30, %v1788_v27 }
 0xd1e   :  { %v1228_v28 = vpack.c.bf16 %v1227_v39, %v1226_v38 }
 0xd20   :  { %1237 = vrot.lane.b32.xlu0 %v1228_v28, %s1931_s7 }
 0xd92   :  { %v1238_v40 = vpop.permute.xlu0 %1237 }
 0xd93   :  { %1519 = vmatmul.mubr.msk.bf16.vlgmr.msra.gmra.mxu0 %vm531_vm0, %v1238_v40 }
 0xe53   :  { %v1276_v43 = vpop.f32.mrf.mxu0 }
 0xe54   :  { %v1277_v8 = vadd.f32 %v1276_v43, %v1232_v42 }
 0xe55   :  { %v1278_v44 = vpop.f32.mrf.mxu0 }
 0xe56   :  { %v1520_v45 = vmul.f32 -1.442695, %v1277_v8  ;;  %v1279_v50 = vadd.f32 %v1278_v44, %v1233_v49 }
 0xe57   :  { %v1280_v14 = vpop.f32.mrf.mxu0 }
 0xe58   :  { %1791 = vpow2.f32 %v1520_v45  ;;  %v1281_v46 = vadd.f32 %v1280_v14, %v1234_v11  ;;  %v1522_v63 = vmul.f32 -1.442695, %v1279_v50 }
 0xe59   :  { %v1282_v31 = vpop.f32.mrf.mxu0 }
 0xe5a   :  { %v1521_v47 = vmul.f32 -1.442695, %v1281_v46  ;;  %v1283_v62 = vadd.f32 %v1282_v31, %v1235_v29 }
 0xe5c   :  { %1793 = vpow2.f32 %v1521_v47  ;;  %v1523_v1 = vmul.f32 -1.442695, %v1283_v62 }
 0xe5d   :  { %1795 = vtanh.f32 %v1279_v50 }
 0xe65   :  { %v1792_v59 = vpop.eup %1791 }
 0xe66   :  { %v1291_v32 = vadd.f32 1.0, %v1792_v59 }
 0xe68   :  { %1797 = vrcp.f32 %v1291_v32 }
 0xe69   :  { %v1794_v23 = vpop.eup %1793  ;;  %1799 = vtanh.f32 %v1283_v62 }
 0xe6a   :  { %v1292_v51 = vadd.f32 1.0, %v1794_v23  ;;  %v1796_v53 = vpop.eup %1795 }
 0xe6c   :  { %1801 = vrcp.f32 %v1292_v51 }
 0xe6d   :  { %1803 = vpow2.f32 %v1522_v63 }
 0xe6e   :  { %1805 = vpow2.f32 %v1523_v1 }
 0xe75   :  { %v1798_v7 = vpop.eup %1797 }
 0xe76   :  { %v1313_v54 = vmul.f32 %v1798_v7, %v1796_v53  ;;  %v1800_v55 = vpop.eup %1799  ;;  %v1311_v3 = vmul.f32 %v1798_v7, %v2206_v25 }
 0xe78   :  { %1317 = vrot.lane.b32.xlu1 %v1313_v54, %s1931_s7 }
 0xe79   :  { %v1802_v56 = vpop.eup %1801 }
 0xe7a   :  { %v1314_v52 = vmul.f32 %v1802_v56, %v1800_v55  ;;  %v1804_v15 = vpop.eup %1803  ;;  %v1312_v6 = vmul.f32 %v1802_v56, %v2209_v35 }
 0xe7b   :  { %v1305_v2 = vadd.f32 1.0, %v1804_v15  ;;  %v1806_v17 = vpop.eup %1805 }
 0xe7c   :  { %1319 = vrot.lane.b32.xlu0 %v1314_v52, %s1931_s7  ;;  %v1306_v5 = vadd.f32 1.0, %v1806_v17 }
 0xe7d   :  { %1807 = vrcp.f32 %v1305_v2 }
 0xe8a   :  { %v1808_v12 = vpop.eup %1807 }
 0xeea   :  { %v1318_v20 = vpop.permute.xlu1 %1317 }
 0xeeb   :  { %v1323_v4 = vadd.f32 %v1318_v20, %v1311_v3 }
 0xeed   :  { %1809 = vtanh.f32 %v1323_v4 }
 0xeee   :  { %v1320_v10 = vpop.permute.xlu0 %1319  ;;  %1811 = vrcp.f32 %v1306_v5 }
 0xeef   :  { %v1324_v9 = vadd.f32 %v1320_v10, %v1312_v6 }
 0xef1   :  { %1813 = vtanh.f32 %v1324_v9 }
 0xefa   :  { %v1810_v48 = vpop.eup %1809 }
 0xefb   :  { %v1327_v13 = vmul.f32 %v1810_v48, %v1808_v12  ;;  %v1812_v16 = vpop.eup %1811 }
 0xefe   :  { %v1814_v18 = vpop.eup %1813 }
 0xeff   :  { %v1328_v21 = vmul.f32 %v1814_v18, %v1812_v16 }
 0xf01   :  { %v1329_v22 = vpack.c.bf16 %v1328_v21, %v1327_v13 }
 0xf03   :  { %1346 = vrot.lane.b32.xlu1 %v1329_v22, %s1931_s7 }
 0xf75   :  { %v1347_v25 = vpop.permute.xlu1 %1346 }
 0xf76   :  { %1560 = vmatmul.mubr.msk.bf16.vlgmr.msra.gmra.mxu1 %vm531_vm0, %v1347_v25 }
0x1036   :  { %v1409_v33 = vpop.f32.mrf.mxu1 }
0x1037   :  { %v1410_v34 = vadd.f32 %v1524_v26, %v1409_v33 }
0x1038   :  { %v1561_v35 = vpop.f32.mrf.mxu1 }
0x1039   :  { %1416 = vst [vmem:[#allocation11] sm:$0xff] %v1410_v34 }
0x103a   :  { %v1412_v37 = vpop.f32.mrf.mxu1 }
0x103b   :  { %v1413_v24 = vadd.f32 %v1524_v26, %v1412_v37 }
0x103c   :  { %v1562_v27 = vpop.f32.mrf.mxu1 }
0x103d   :  { %1417 = vst [vmem:[#allocation11 + $0x8] sm:$0xff] %v1413_v24 }
0x103e   :  { %1910 = shalt.err (!%p1907_p10)
}
0x103f   :  { %1429 = dma.vmem_to_hbm [thread:$0]  %s1424_s21, 256, %s2241_s6, [#allocation5], %s1928_s24, %s1928_s24, %s1929_s25  }
0x1040   :  { %1925 = dma.done.wait [#allocation5], 256  }
0x1041   :  { %1926 = vsyncadd [#allocation5], 4294967040 }
0x1042   :  { %1433 = vsyncpa [#allocation4], 1 }
0x1043   :  { %1434 = vsyncpa [#allocation7], 1 }
0x1044   :  { %1435 = vsyncpa [#allocation10], 1 }
0x1045   :  { %1436 = vsyncpa [#allocation5], 1 }

</bundles_post_ra>
